<compile_context>
chip_gen: v7x
topology: tpu7x:2x2x1
jax: 0.10.0
libtpu: 0.0.40
codegen_flags: <defaults>
</compile_context>

<pallas_src>
import functools

import jax
import jax.numpy as jnp
from jax import lax
from jax.experimental import pallas as pl
from jax.experimental.pallas import tpu as pltpu

NEG_SLOPE = 0.2      # PyG GATConv default LeakyReLU negative slope
NEG_BIG = -1.0e30    # finite "-inf" for masked logits / running-max init


def _pick_row_tile(n, cap):
    """Largest multiple-of-8 divisor of n that is <= cap and (when possible)
    <= n//2, so the "parallel" grid axis has >= 2 steps (v7x megacore)."""
    hi = min(cap, n // 2 if n >= 16 else n)
    hi = (hi // 8) * 8
    for t in range(hi, 0, -8):
        if n % t == 0:
            return t
    return n  # n < 8 or not a multiple of 8: single full-extent block


def _pick_src_tile(n, cap=512):
    """Source (lane) tile: a multiple of 128 dividing n, else the full extent."""
    if n % 128 == 0:
        hi = (min(cap, n) // 128) * 128
        for t in range(hi, 0, -128):
            if n % t == 0:
                return t
    return n


# ---------------------------------------------------------------------------
# Kernel 1: projection + fused attention-score matmul
# ---------------------------------------------------------------------------
def _proj_kernel(x_ref, w_ref, acat_ref, h_ref, s_ref):
    xb = x_ref[...].astype(jnp.bfloat16)            # no-op for bf16 inputs
    h = jnp.dot(xb, w_ref[...], preferred_element_type=jnp.float32)   # [Tn, H*D]
    hb = h.astype(jnp.bfloat16)
    h_ref[...] = hb
    # scores[:, hd]       = <h_hd, a_src[hd]>
    # scores[:, H + hd]   = <h_hd, a_dst[hd]>      (A_cat is block structured)
    s_ref[...] = jnp.dot(hb, acat_ref[...], preferred_element_type=jnp.float32)


def gat_project(x, w_bf16, acat_bf16, heads, out_dim):
    n, fin = x.shape
    hd_dim = heads * out_dim
    tn = _pick_row_tile(n, cap=1024)   # proj is DMA/overhead bound: big tiles
    return pl.pallas_call(
        _proj_kernel,
        out_shape=(jax.ShapeDtypeStruct((n, hd_dim), jnp.bfloat16),
                   jax.ShapeDtypeStruct((n, 2 * heads), jnp.float32)),
        grid=(n // tn,),
        in_specs=[pl.BlockSpec((tn, fin), lambda i: (i, 0)),
                  pl.BlockSpec((fin, hd_dim), lambda i: (0, 0)),
                  pl.BlockSpec((hd_dim, 2 * heads), lambda i: (0, 0))],
        out_specs=(pl.BlockSpec((tn, hd_dim), lambda i: (i, 0)),
                   pl.BlockSpec((tn, 2 * heads), lambda i: (i, 0))),
        compiler_params=pltpu.CompilerParams(
            dimension_semantics=("parallel",)),
    )(x, w_bf16, acat_bf16)


# ---------------------------------------------------------------------------
# Kernel 2: flash-style masked-softmax attention + aggregation (+ epilogue)
# ---------------------------------------------------------------------------
def _attn_kernel(adj_ref, sdst_ref, ssrc_ref, h_ref, bias_ref, o_ref,
                 m_ref, l_ref, acc_ref, *, heads, out_dim, apply_relu,
                 apply_l2norm):
    j = pl.program_id(1)

    @pl.when(j == 0)
    def _():
        m_ref[...] = jnp.full_like(m_ref, NEG_BIG)
        l_ref[...] = jnp.zeros_like(l_ref)
        acc_ref[...] = jnp.zeros_like(acc_ref)

    edge = adj_ref[...] > 0                        # [Tt, Ts] bool (cmp hoisted)
    h_blk = h_ref[...]                             # [Ts, H*D] bf16
    m_old = m_ref[...]                             # [Tt, H]
    l_old = l_ref[...]                             # [Tt, H]
    tt = m_old.shape[0]

    m_parts, l_parts, scale_parts, contrib_parts = [], [], [], []
    for hd in range(heads):                        # heads is 1 or 2: static loop
        lo = hd * out_dim
        # e[t, s] = LeakyReLU(<h_t, a_dst> + <h_s, a_src>)
        e = sdst_ref[:, hd:hd + 1] + ssrc_ref[hd:hd + 1, :]    # [Tt, Ts]
        e = jnp.maximum(e, NEG_SLOPE * e)                      # LeakyReLU (2 passes)
        e = jnp.where(edge, e, NEG_BIG)                        # masked logits
        m_blk = jnp.max(e, axis=-1, keepdims=True)             # masked block max
        m_new = jnp.maximum(m_old[:, hd:hd + 1], m_blk)        # running max
        a = jnp.exp(m_old[:, hd:hd + 1] - m_new)               # [Tt, 1] rescale
        p = jnp.exp(e - m_new)                                 # unnormalized weights
        l_parts.append(a * l_old[:, hd:hd + 1]
                       + jnp.sum(p, axis=-1, keepdims=True))
        contrib_parts.append(jnp.dot(p.astype(jnp.bfloat16),
                                     h_blk[:, lo:lo + out_dim],
                                     preferred_element_type=jnp.float32))
        scale_parts.append(jnp.broadcast_to(a, (tt, out_dim)))
        m_parts.append(m_new)

    # Lane-dense, full-width scratch updates (no per-head masked column stores).
    m_ref[...] = jnp.concatenate(m_parts, axis=1)
    l_ref[...] = jnp.concatenate(l_parts, axis=1)
    acc_ref[...] = (jnp.concatenate(scale_parts, axis=1) * acc_ref[...]
                    + jnp.concatenate(contrib_parts, axis=1))

    # Deferred softmax normalization + bias / ReLU / L2 epilogue, single store.
    @pl.when(j == pl.num_programs(1) - 1)
    def _():
        inv = pl.reciprocal(jnp.maximum(l_ref[...], 1e-20), approx=True)  # EUP
        inv_full = jnp.concatenate(
            [jnp.broadcast_to(inv[:, hd:hd + 1], (tt, out_dim))
             for hd in range(heads)], axis=1)
        y = acc_ref[...] * inv_full + bias_ref[...]
        if apply_relu:
            y = jnp.maximum(y, 0.0)
        if apply_l2norm:
            ss = jnp.sum(y * y, axis=-1, keepdims=True)
            y = y * lax.rsqrt(jnp.maximum(ss, 1e-24))   # == x / max(||x||, 1e-12)
        o_ref[...] = y.astype(o_ref.dtype)


def gat_attend(adj_bf16, s_dst, s_src_t, h_bf16, bias, *, heads, out_dim,
               apply_relu, apply_l2norm, out_dtype):
    n = adj_bf16.shape[0]
    hd_dim = heads * out_dim
    tt = _pick_row_tile(n, cap=256)   # target tile ("parallel")
    ts = _pick_src_tile(n)            # source tile ("arbitrary", online softmax)
    kernel = functools.partial(_attn_kernel, heads=heads, out_dim=out_dim,
                               apply_relu=apply_relu, apply_l2norm=apply_l2norm)
    return pl.pallas_call(
        kernel,
        out_shape=jax.ShapeDtypeStruct((n, hd_dim), out_dtype),
        grid=(n // tt, n // ts),
        in_specs=[pl.BlockSpec((tt, ts), lambda i, j: (i, j)),      # adj tile
                  pl.BlockSpec((tt, heads), lambda i, j: (i, 0)),   # <h_t, a_dst>
                  pl.BlockSpec((heads, ts), lambda i, j: (0, j)),   # <h_s, a_src>^T
                  pl.BlockSpec((ts, hd_dim), lambda i, j: (j, 0)),  # source h tile
                  pl.BlockSpec((1, hd_dim), lambda i, j: (0, 0))],  # bias
        out_specs=pl.BlockSpec((tt, hd_dim), lambda i, j: (i, 0)),
        scratch_shapes=[pltpu.VMEM((tt, heads), jnp.float32),       # running max
                        pltpu.VMEM((tt, heads), jnp.float32),       # running sum
                        pltpu.VMEM((tt, hd_dim), jnp.float32)],     # accumulator
        compiler_params=pltpu.CompilerParams(
            dimension_semantics=("parallel", "arbitrary")),
    )(adj_bf16, s_dst, s_src_t, h_bf16, bias)


# ---------------------------------------------------------------------------
# Layer / model wrappers
# ---------------------------------------------------------------------------
def gat_layer(x, adj_bf16, params, *, heads, out_dim, apply_relu, apply_l2norm,
              out_dtype):
    # TODO(synk): for very small graphs (N <= a few hundred) a single fused
    # projection+attention pallas_call per layer would amortize per-call overhead.
    h, scores = gat_project(x, params["w"], params["a_cat"], heads, out_dim)
    s_src_t = scores[:, :heads].T        # tiny [N, heads] XLA transpose
    s_dst = scores[:, heads:]            # [N, heads]
    return gat_attend(adj_bf16, s_dst, s_src_t, h, params["bias"],
                      heads=heads, out_dim=out_dim, apply_relu=apply_relu,
                      apply_l2norm=apply_l2norm, out_dtype=out_dtype)


def init_gat_params(key, in_dim, out_dim, heads):
    kw, ks, kd = jax.random.split(key, 3)

    def glorot(k, shape):
        return jax.random.normal(k, shape, jnp.float32) * jnp.sqrt(
            2.0 / (shape[0] + shape[-1]))

    w = glorot(kw, (in_dim, heads * out_dim))
    a_src = glorot(ks, (heads, out_dim))
    a_dst = glorot(kd, (heads, out_dim))
    # Block-structured [heads*out_dim, 2*heads] so one matmul gives all per-head
    # src/dst attention scores.
    a_cat = jnp.zeros((heads * out_dim, 2 * heads), jnp.float32)
    for h in range(heads):
        a_cat = a_cat.at[h * out_dim:(h + 1) * out_dim, h].set(a_src[h])
        a_cat = a_cat.at[h * out_dim:(h + 1) * out_dim, heads + h].set(a_dst[h])
    return {
        "w": w.astype(jnp.bfloat16),
        "a_cat": a_cat.astype(jnp.bfloat16),
        "bias": jnp.zeros((1, heads * out_dim), jnp.float32),
    }


def init_papagat(key, *, num_steps, emb_dim, hidden_size, num_heads, repr_dim):
    # Layer configs mirror PAPAGATChannel.__init__
    cfgs = []
    if num_steps >= 2:
        cfgs.append((emb_dim, hidden_size, num_heads))
        for _ in range(num_steps - 2):
            cfgs.append((hidden_size * num_heads, hidden_size, num_heads))
        cfgs.append((hidden_size * num_heads, repr_dim, 1))
    else:
        cfgs.append((emb_dim, repr_dim, 1))
    keys = jax.random.split(key, len(cfgs))
    params = [init_gat_params(k, i, o, h) for k, (i, o, h) in zip(keys, cfgs)]
    return params, cfgs


def papagat_forward(x, adj_list, params, cfgs):
    # TODO(synk): attention dropout is training-only; omitted (eval-mode forward).
    if len(adj_list) != len(cfgs):
        raise RuntimeError(
            'Number of input adjacency matrices is not equal to step number!')
    # adj is the only O(N^2) stream: bf16 (0/1 exact). Only cast if the caller
    # did not already provide bf16 (hoists the O(N^2) cast out of the hot path).
    adj_bf = [a if a.dtype == jnp.bfloat16 else a.astype(jnp.bfloat16)
              for a in adj_list]
    num_steps = len(cfgs)
    for step in range(num_steps - 1):
        _, out_dim, heads = cfgs[step]
        # Intermediate activations in bf16: halves inter-layer HBM writeback and
        # the next projection's input DMA.
        x = gat_layer(x, adj_bf[step], params[step], heads=heads,
                      out_dim=out_dim, apply_relu=True, apply_l2norm=False,
                      out_dtype=jnp.bfloat16)
    _, out_dim, heads = cfgs[-1]
    x = gat_layer(x, adj_bf[-1], params[-1], heads=heads, out_dim=out_dim,
                  apply_relu=False, apply_l2norm=True, out_dtype=jnp.float32)
    return x


if __name__ == "__main__":
    key = jax.random.PRNGKey(0)
    N = 32
    num_steps, emb_dim, hidden, heads, repr_dim = 3, 16, 16, 2, 16

    kx, kp, *kadj = jax.random.split(key, 2 + num_steps)
    x = jax.random.normal(kx, (N, emb_dim), jnp.float32)

    eye = jnp.eye(N, dtype=jnp.float32)
    adj_list = []
    for k in kadj:
        rnd = jax.random.uniform(k, (N, N))
        adj = (rnd < 0.3).astype(jnp.float32)
        # add self-loops (PyG default) and cast to bf16 ONCE, outside the forward
        adj_list.append(jnp.maximum(adj, eye).astype(jnp.bfloat16))

    params, cfgs = init_papagat(kp, num_steps=num_steps, emb_dim=emb_dim,
                                hidden_size=hidden, num_heads=heads,
                                repr_dim=repr_dim)

    forward = jax.jit(lambda xx, aa, pp: papagat_forward(xx, aa, pp, cfgs))
    out = forward(x, adj_list, params)
    jax.block_until_ready(out)
    print("KERNEL_OK")
</pallas_src>

<mosaic_0001>
module attributes {stable_mosaic.version = 11 : i64} {
  func.func @_proj_kernel(%arg0: i32, %arg1: memref<16x16xf32, #tpu.memory_space<vmem>>, %arg2: memref<16x32xbf16, #tpu.memory_space<vmem>>, %arg3: memref<32x4xbf16, #tpu.memory_space<vmem>>, %arg4: memref<16x32xbf16, #tpu.memory_space<vmem>>, %arg5: memref<16x4xf32, #tpu.memory_space<vmem>>) attributes {dimension_semantics = [#tpu.dimension_semantics<parallel>], iteration_bounds = array<i64: 2>, scalar_prefetch = 0 : i64, scratch_operands = 0 : i64, tpu.core_type = #tpu.core_type<tc>, window_params = [{transform_indices = @transform_0, window_bounds = array<i64: 16, 16>}, {pipeline_mode = #tpu.pipeline_mode<synchronous>, transform_indices = @transform_1, window_bounds = array<i64: 16, 32>}, {pipeline_mode = #tpu.pipeline_mode<synchronous>, transform_indices = @transform_2, window_bounds = array<i64: 32, 4>}, {transform_indices = @transform_3, window_bounds = array<i64: 16, 32>}, {transform_indices = @transform_4, window_bounds = array<i64: 16, 4>}]} {
    %c0 = arith.constant 0 : index
    %c0_0 = arith.constant 0 : index
    %0 = vector.load %arg1[%c0, %c0_0] : memref<16x16xf32, #tpu.memory_space<vmem>>, vector<16x16xf32>
    %1 = arith.truncf %0 : vector<16x16xf32> to vector<16x16xbf16>
    %c0_1 = arith.constant 0 : index
    %c0_2 = arith.constant 0 : index
    %2 = vector.load %arg2[%c0_1, %c0_2] : memref<16x32xbf16, #tpu.memory_space<vmem>>, vector<16x32xbf16>
    %cst = arith.constant dense<0.000000e+00> : vector<16x32xf32>
    %3 = tpu.matmul %1, %2, %cst {dimension_numbers = #tpu.dot_dimension_numbers<[1], [0], [0], [1], [0, 0, 1, 1], [], []>} : vector<16x16xbf16>, vector<16x32xbf16>, vector<16x32xf32> -> vector<16x32xf32>
    %4 = arith.truncf %3 : vector<16x32xf32> to vector<16x32xbf16>
    %c0_3 = arith.constant 0 : index
    %c0_4 = arith.constant 0 : index
    %5 = vector.load %arg4[%c0_3, %c0_4] : memref<16x32xbf16, #tpu.memory_space<vmem>>, vector<16x32xbf16>
    tpu.vector_store %arg4[%c0_3, %c0_4], %4 {strides = array<i32>} : memref<16x32xbf16, #tpu.memory_space<vmem>>, vector<16x32xbf16>,
    %c0_5 = arith.constant 0 : index
    %c0_6 = arith.constant 0 : index
    %6 = vector.load %arg3[%c0_5, %c0_6] : memref<32x4xbf16, #tpu.memory_space<vmem>>, vector<32x4xbf16>
    %cst_7 = arith.constant dense<0.000000e+00> : vector<16x4xf32>
    %7 = tpu.matmul %4, %6, %cst_7 {dimension_numbers = #tpu.dot_dimension_numbers<[1], [0], [0], [1], [0, 0, 1, 1], [], []>} : vector<16x32xbf16>, vector<32x4xbf16>, vector<16x4xf32> -> vector<16x4xf32>
    %c0_8 = arith.constant 0 : index
    %c0_9 = arith.constant 0 : index
    %8 = vector.load %arg5[%c0_8, %c0_9] : memref<16x4xf32, #tpu.memory_space<vmem>>, vector<16x4xf32>
    tpu.vector_store %arg5[%c0_8, %c0_9], %7 {strides = array<i32>} : memref<16x4xf32, #tpu.memory_space<vmem>>, vector<16x4xf32>,
    return
  }
  func.func @transform_0(%arg0: i32) -> (i32, i32) {
    %c0_i32 = arith.constant 0 : i32
    %c0_i32_0 = arith.constant 0 : i32
    return %arg0, %c0_i32 : i32, i32
  }
  func.func @transform_1(%arg0: i32) -> (i32, i32) {
    %c0_i32 = arith.constant 0 : i32
    %c0_i32_0 = arith.constant 0 : i32
    %c0_i32_1 = arith.constant 0 : i32
    return %c0_i32, %c0_i32_0 : i32, i32
  }
  func.func @transform_2(%arg0: i32) -> (i32, i32) {
    %c0_i32 = arith.constant 0 : i32
    %c0_i32_0 = arith.constant 0 : i32
    %c0_i32_1 = arith.constant 0 : i32
    return %c0_i32, %c0_i32_0 : i32, i32
  }
  func.func @transform_3(%arg0: i32) -> (i32, i32) {
    %c0_i32 = arith.constant 0 : i32
    %c0_i32_0 = arith.constant 0 : i32
    return %arg0, %c0_i32 : i32, i32
  }
  func.func @transform_4(%arg0: i32) -> (i32, i32) {
    %c0_i32 = arith.constant 0 : i32
    %c0_i32_0 = arith.constant 0 : i32
    return %arg0, %c0_i32 : i32, i32
  }
}

module attributes {stable_mosaic.version = 11 : i64} {
  func.func @_proj_kernel(%arg0: i32, %arg1: memref<16x32xbf16, #tpu.memory_space<vmem>>, %arg2: memref<32x32xbf16, #tpu.memory_space<vmem>>, %arg3: memref<32x4xbf16, #tpu.memory_space<vmem>>, %arg4: memref<16x32xbf16, #tpu.memory_space<vmem>>, %arg5: memref<16x4xf32, #tpu.memory_space<vmem>>) attributes {dimension_semantics = [#tpu.dimension_semantics<parallel>], iteration_bounds = array<i64: 2>, scalar_prefetch = 0 : i64, scratch_operands = 0 : i64, tpu.core_type = #tpu.core_type<tc>, window_params = [{transform_indices = @transform_0, window_bounds = array<i64: 16, 32>}, {pipeline_mode = #tpu.pipeline_mode<synchronous>, transform_indices = @transform_1, window_bounds = array<i64: 32, 32>}, {pipeline_mode = #tpu.pipeline_mode<synchronous>, transform_indices = @transform_2, window_bounds = array<i64: 32, 4>}, {transform_indices = @transform_3, window_bounds = array<i64: 16, 32>}, {transform_indices = @transform_4, window_bounds = array<i64: 16, 4>}]} {
    %c0 = arith.constant 0 : index
    %c0_0 = arith.constant 0 : index
    %0 = vector.load %arg1[%c0, %c0_0] : memref<16x32xbf16, #tpu.memory_space<vmem>>, vector<16x32xbf16>
    %c0_1 = arith.constant 0 : index
    %c0_2 = arith.constant 0 : index
    %1 = vector.load %arg2[%c0_1, %c0_2] : memref<32x32xbf16, #tpu.memory_space<vmem>>, vector<32x32xbf16>
    %cst = arith.constant dense<0.000000e+00> : vector<16x32xf32>
    %2 = tpu.matmul %0, %1, %cst {dimension_numbers = #tpu.dot_dimension_numbers<[1], [0], [0], [1], [0, 0, 1, 1], [], []>} : vector<16x32xbf16>, vector<32x32xbf16>, vector<16x32xf32> -> vector<16x32xf32>
    %3 = arith.truncf %2 : vector<16x32xf32> to vector<16x32xbf16>
    %c0_3 = arith.constant 0 : index
    %c0_4 = arith.constant 0 : index
    %4 = vector.load %arg4[%c0_3, %c0_4] : memref<16x32xbf16, #tpu.memory_space<vmem>>, vector<16x32xbf16>
    tpu.vector_store %arg4[%c0_3, %c0_4], %3 {strides = array<i32>} : memref<16x32xbf16, #tpu.memory_space<vmem>>, vector<16x32xbf16>,
    %c0_5 = arith.constant 0 : index
    %c0_6 = arith.constant 0 : index
    %5 = vector.load %arg3[%c0_5, %c0_6] : memref<32x4xbf16, #tpu.memory_space<vmem>>, vector<32x4xbf16>
    %cst_7 = arith.constant dense<0.000000e+00> : vector<16x4xf32>
    %6 = tpu.matmul %3, %5, %cst_7 {dimension_numbers = #tpu.dot_dimension_numbers<[1], [0], [0], [1], [0, 0, 1, 1], [], []>} : vector<16x32xbf16>, vector<32x4xbf16>, vector<16x4xf32> -> vector<16x4xf32>
    %c0_8 = arith.constant 0 : index
    %c0_9 = arith.constant 0 : index
    %7 = vector.load %arg5[%c0_8, %c0_9] : memref<16x4xf32, #tpu.memory_space<vmem>>, vector<16x4xf32>
    tpu.vector_store %arg5[%c0_8, %c0_9], %6 {strides = array<i32>} : memref<16x4xf32, #tpu.memory_space<vmem>>, vector<16x4xf32>,
    return
  }
  func.func @transform_0(%arg0: i32) -> (i32, i32) {
    %c0_i32 = arith.constant 0 : i32
    %c0_i32_0 = arith.constant 0 : i32
    return %arg0, %c0_i32 : i32, i32
  }
  func.func @transform_1(%arg0: i32) -> (i32, i32) {
    %c0_i32 = arith.constant 0 : i32
    %c0_i32_0 = arith.constant 0 : i32
    %c0_i32_1 = arith.constant 0 : i32
    return %c0_i32, %c0_i32_0 : i32, i32
  }
  func.func @transform_2(%arg0: i32) -> (i32, i32) {
    %c0_i32 = arith.constant 0 : i32
    %c0_i32_0 = arith.constant 0 : i32
    %c0_i32_1 = arith.constant 0 : i32
    return %c0_i32, %c0_i32_0 : i32, i32
  }
  func.func @transform_3(%arg0: i32) -> (i32, i32) {
    %c0_i32 = arith.constant 0 : i32
    %c0_i32_0 = arith.constant 0 : i32
    return %arg0, %c0_i32 : i32, i32
  }
  func.func @transform_4(%arg0: i32) -> (i32, i32) {
    %c0_i32 = arith.constant 0 : i32
    %c0_i32_0 = arith.constant 0 : i32
    return %arg0, %c0_i32 : i32, i32
  }
}

module attributes {stable_mosaic.version = 11 : i64} {
  func.func @_attn_kernel(%arg0: i32, %arg1: i32, %arg2: memref<16x32xbf16, #tpu.memory_space<vmem>>, %arg3: memref<16x2xf32, #tpu.memory_space<vmem>>, %arg4: memref<2x32xf32, #tpu.memory_space<vmem>>, %arg5: memref<32x32xbf16, #tpu.memory_space<vmem>>, %arg6: memref<1x32xf32, #tpu.memory_space<vmem>>, %arg7: memref<16x32xbf16, #tpu.memory_space<vmem>>, %arg8: memref<16x2xf32, #tpu.memory_space<vmem>>, %arg9: memref<16x2xf32, #tpu.memory_space<vmem>>, %arg10: memref<16x32xf32, #tpu.memory_space<vmem>>) attributes {dimension_semantics = [#tpu.dimension_semantics<parallel>, #tpu.dimension_semantics<arbitrary>], iteration_bounds = array<i64: 2, 1>, scalar_prefetch = 0 : i64, scratch_operands = 3 : i64, tpu.core_type = #tpu.core_type<tc>, window_params = [{transform_indices = @transform_0, window_bounds = array<i64: 16, 32>}, {transform_indices = @transform_1, window_bounds = array<i64: 16, 2>}, {transform_indices = @transform_2, window_bounds = array<i64: 2, 32>}, {transform_indices = @transform_3, window_bounds = array<i64: 32, 32>}, {pipeline_mode = #tpu.pipeline_mode<synchronous>, transform_indices = @transform_4, window_bounds = array<i64: 1, 32>}, {transform_indices = @transform_5, window_bounds = array<i64: 16, 32>}]} {
    %c0_i32 = arith.constant 0 : i32
    %0 = arith.cmpi eq, %arg1, %c0_i32 : i32
    %1 = arith.extui %0 : i1 to i32
    %c0_i32_0 = arith.constant 0 : i32
    %2 = arith.cmpi ne, %1, %c0_i32_0 : i32
    scf.if %2 {
      %cst_35 = arith.constant -1.000000e+30 : f32
      %82 = vector.broadcast %cst_35 : f32 to vector<16x2xf32>
      %c0_36 = arith.constant 0 : index
      %c0_37 = arith.constant 0 : index
      %83 = vector.load %arg8[%c0_36, %c0_37] : memref<16x2xf32, #tpu.memory_space<vmem>>, vector<16x2xf32>
      tpu.vector_store %arg8[%c0_36, %c0_37], %82 {strides = array<i32>} : memref<16x2xf32, #tpu.memory_space<vmem>>, vector<16x2xf32>,
      %cst_38 = arith.constant 0.000000e+00 : f32
      %84 = vector.broadcast %cst_38 : f32 to vector<16x2xf32>
      %c0_39 = arith.constant 0 : index
      %c0_40 = arith.constant 0 : index
      %85 = vector.load %arg9[%c0_39, %c0_40] : memref<16x2xf32, #tpu.memory_space<vmem>>, vector<16x2xf32>
      tpu.vector_store %arg9[%c0_39, %c0_40], %84 {strides = array<i32>} : memref<16x2xf32, #tpu.memory_space<vmem>>, vector<16x2xf32>,
      %cst_41 = arith.constant 0.000000e+00 : f32
      %86 = vector.broadcast %cst_41 : f32 to vector<16x32xf32>
      %c0_42 = arith.constant 0 : index
      %c0_43 = arith.constant 0 : index
      %87 = vector.load %arg10[%c0_42, %c0_43] : memref<16x32xf32, #tpu.memory_space<vmem>>, vector<16x32xf32>
      tpu.vector_store %arg10[%c0_42, %c0_43], %86 {strides = array<i32>} : memref<16x32xf32, #tpu.memory_space<vmem>>, vector<16x32xf32>,
    } else {
    }
    %c0 = arith.constant 0 : index
    %c0_1 = arith.constant 0 : index
    %3 = vector.load %arg2[%c0, %c0_1] : memref<16x32xbf16, #tpu.memory_space<vmem>>, vector<16x32xbf16>
    %cst = arith.constant 0.000000e+00 : bf16
    %4 = vector.broadcast %cst : bf16 to vector<16x32xbf16>
    %5 = arith.cmpf ogt, %3, %4 : vector<16x32xbf16>
    %c0_2 = arith.constant 0 : index
    %c0_3 = arith.constant 0 : index
    %6 = vector.load %arg5[%c0_2, %c0_3] : memref<32x32xbf16, #tpu.memory_space<vmem>>, vector<32x32xbf16>
    %c0_4 = arith.constant 0 : index
    %c0_5 = arith.constant 0 : index
    %7 = vector.load %arg8[%c0_4, %c0_5] : memref<16x2xf32, #tpu.memory_space<vmem>>, vector<16x2xf32>
    %c0_6 = arith.constant 0 : index
    %c0_7 = arith.constant 0 : index
    %8 = vector.load %arg9[%c0_6, %c0_7] : memref<16x2xf32, #tpu.memory_space<vmem>>, vector<16x2xf32>
    %c0_8 = arith.constant 0 : index
    %c0_9 = arith.constant 0 : index
    %9 = vector.load %arg3[%c0_8, %c0_9] : memref<16x2xf32, #tpu.memory_space<vmem>>, vector<16x1xf32>
    %c0_10 = arith.constant 0 : index
    %c0_11 = arith.constant 0 : index
    %10 = vector.load %arg4[%c0_10, %c0_11] : memref<2x32xf32, #tpu.memory_space<vmem>>, vector<1x32xf32>
    %11 = vector.broadcast %9 : vector<16x1xf32> to vector<16x32xf32>
    %12 = vector.broadcast %10 : vector<1x32xf32> to vector<16x32xf32>
    %13 = arith.addf %11, %12 : vector<16x32xf32>
    %cst_12 = arith.constant 2.000000e-01 : f32
    %14 = vector.broadcast %cst_12 : f32 to vector<16x32xf32>
    %15 = arith.mulf %14, %13 : vector<16x32xf32>
    %16 = arith.maximumf %13, %15 : vector<16x32xf32>
    %cst_13 = arith.constant -1.000000e+30 : f32
    %17 = vector.broadcast %cst_13 : f32 to vector<16x32xf32>
    %18 = arith.select %5, %16, %17 : vector<16x32xi1>, vector<16x32xf32>
    %cst_14 = arith.constant dense<0xFF800000> : vector<16xf32>
    %19 = vector.multi_reduction <maximumf>, %18, %cst_14 [1] : vector<16x32xf32> to vector<16xf32>
    %20 = vector.shape_cast %19 : vector<16xf32> to vector<16x1xf32>
    %21 = vector.extract_strided_slice %7 {offsets = [0, 0], sizes = [16, 1], strides = [1, 1]} : vector<16x2xf32> to vector<16x1xf32>
    %22 = arith.maximumf %21, %20 : vector<16x1xf32>
    %23 = vector.extract_strided_slice %7 {offsets = [0, 0], sizes = [16, 1], strides = [1, 1]} : vector<16x2xf32> to vector<16x1xf32>
    %24 = arith.subf %23, %22 : vector<16x1xf32>
    %25 = math.exp %24 : vector<16x1xf32>
    %26 = vector.broadcast %22 : vector<16x1xf32> to vector<16x32xf32>
    %27 = arith.subf %18, %26 : vector<16x32xf32>
    %28 = math.exp %27 : vector<16x32xf32>
    %29 = vector.extract_strided_slice %8 {offsets = [0, 0], sizes = [16, 1], strides = [1, 1]} : vector<16x2xf32> to vector<16x1xf32>
    %30 = arith.mulf %25, %29 : vector<16x1xf32>
    %cst_15 = arith.constant dense<0.000000e+00> : vector<16xf32>
    %31 = vector.multi_reduction <add>, %28, %cst_15 [1] : vector<16x32xf32> to vector<16xf32>
    %32 = vector.shape_cast %31 : vector<16xf32> to vector<16x1xf32>
    %33 = arith.addf %30, %32 : vector<16x1xf32>
    %34 = arith.truncf %28 : vector<16x32xf32> to vector<16x32xbf16>
    %35 = vector.extract_strided_slice %6 {offsets = [0, 0], sizes = [32, 16], strides = [1, 1]} : vector<32x32xbf16> to vector<32x16xbf16>
    %cst_16 = arith.constant dense<0.000000e+00> : vector<16x16xf32>
    %36 = tpu.matmul %34, %35, %cst_16 {dimension_numbers = #tpu.dot_dimension_numbers<[1], [0], [0], [1], [0, 0, 1, 1], [], []>} : vector<16x32xbf16>, vector<32x16xbf16>, vector<16x16xf32> -> vector<16x16xf32>
    %37 = vector.shape_cast %25 : vector<16x1xf32> to vector<16x1xf32>
    %38 = vector.broadcast %37 : vector<16x1xf32> to vector<16x16xf32>
    %c0_17 = arith.constant 0 : index
    %c1 = arith.constant 1 : index
    %39 = vector.load %arg3[%c0_17, %c1] : memref<16x2xf32, #tpu.memory_space<vmem>>, vector<16x1xf32>
    %c1_18 = arith.constant 1 : index
    %c0_19 = arith.constant 0 : index
    %40 = vector.load %arg4[%c1_18, %c0_19] : memref<2x32xf32, #tpu.memory_space<vmem>>, vector<1x32xf32>
    %41 = vector.broadcast %39 : vector<16x1xf32> to vector<16x32xf32>
    %42 = vector.broadcast %40 : vector<1x32xf32> to vector<16x32xf32>
    %43 = arith.addf %41, %42 : vector<16x32xf32>
    %cst_20 = arith.constant 2.000000e-01 : f32
    %44 = vector.broadcast %cst_20 : f32 to vector<16x32xf32>
    %45 = arith.mulf %44, %43 : vector<16x32xf32>
    %46 = arith.maximumf %43, %45 : vector<16x32xf32>
    %cst_21 = arith.constant -1.000000e+30 : f32
    %47 = vector.broadcast %cst_21 : f32 to vector<16x32xf32>
    %48 = arith.select %5, %46, %47 : vector<16x32xi1>, vector<16x32xf32>
    %cst_22 = arith.constant dense<0xFF800000> : vector<16xf32>
    %49 = vector.multi_reduction <maximumf>, %48, %cst_22 [1] : vector<16x32xf32> to vector<16xf32>
    %50 = vector.shape_cast %49 : vector<16xf32> to vector<16x1xf32>
    %51 = vector.extract_strided_slice %7 {offsets = [0, 1], sizes = [16, 1], strides = [1, 1]} : vector<16x2xf32> to vector<16x1xf32>
    %52 = arith.maximumf %51, %50 : vector<16x1xf32>
    %53 = vector.extract_strided_slice %7 {offsets = [0, 1], sizes = [16, 1], strides = [1, 1]} : vector<16x2xf32> to vector<16x1xf32>
    %54 = arith.subf %53, %52 : vector<16x1xf32>
    %55 = math.exp %54 : vector<16x1xf32>
    %56 = vector.broadcast %52 : vector<16x1xf32> to vector<16x32xf32>
    %57 = arith.subf %48, %56 : vector<16x32xf32>
    %58 = math.exp %57 : vector<16x32xf32>
    %59 = vector.extract_strided_slice %8 {offsets = [0, 1], sizes = [16, 1], strides = [1, 1]} : vector<16x2xf32> to vector<16x1xf32>
    %60 = arith.mulf %55, %59 : vector<16x1xf32>
    %cst_23 = arith.constant dense<0.000000e+00> : vector<16xf32>
    %61 = vector.multi_reduction <add>, %58, %cst_23 [1] : vector<16x32xf32> to vector<16xf32>
    %62 = vector.shape_cast %61 : vector<16xf32> to vector<16x1xf32>
    %63 = arith.addf %60, %62 : vector<16x1xf32>
    %64 = arith.truncf %58 : vector<16x32xf32> to vector<16x32xbf16>
    %65 = vector.extract_strided_slice %6 {offsets = [0, 16], sizes = [32, 16], strides = [1, 1]} : vector<32x32xbf16> to vector<32x16xbf16>
    %cst_24 = arith.constant dense<0.000000e+00> : vector<16x16xf32>
    %66 = tpu.matmul %64, %65, %cst_24 {dimension_numbers = #tpu.dot_dimension_numbers<[1], [0], [0], [1], [0, 0, 1, 1], [], []>} : vector<16x32xbf16>, vector<32x16xbf16>, vector<16x16xf32> -> vector<16x16xf32>
    %67 = vector.shape_cast %55 : vector<16x1xf32> to vector<16x1xf32>
    %68 = vector.broadcast %67 : vector<16x1xf32> to vector<16x16xf32>
    %69 = tpu.concatenate %22, %52 in 1 : vector<16x1xf32>, vector<16x1xf32> -> vector<16x2xf32>
    %c0_25 = arith.constant 0 : index
    %c0_26 = arith.constant 0 : index
    %70 = vector.load %arg8[%c0_25, %c0_26] : memref<16x2xf32, #tpu.memory_space<vmem>>, vector<16x2xf32>
    tpu.vector_store %arg8[%c0_25, %c0_26], %69 {strides = array<i32>} : memref<16x2xf32, #tpu.memory_space<vmem>>, vector<16x2xf32>,
    %71 = tpu.concatenate %33, %63 in 1 : vector<16x1xf32>, vector<16x1xf32> -> vector<16x2xf32>
    %c0_27 = arith.constant 0 : index
    %c0_28 = arith.constant 0 : index
    %72 = vector.load %arg9[%c0_27, %c0_28] : memref<16x2xf32, #tpu.memory_space<vmem>>, vector<16x2xf32>
    tpu.vector_store %arg9[%c0_27, %c0_28], %71 {strides = array<i32>} : memref<16x2xf32, #tpu.memory_space<vmem>>, vector<16x2xf32>,
    %73 = tpu.concatenate %38, %68 in 1 : vector<16x16xf32>, vector<16x16xf32> -> vector<16x32xf32>
    %c0_29 = arith.constant 0 : index
    %c0_30 = arith.constant 0 : index
    %74 = vector.load %arg10[%c0_29, %c0_30] : memref<16x32xf32, #tpu.memory_space<vmem>>, vector<16x32xf32>
    %75 = arith.mulf %73, %74 : vector<16x32xf32>
    %76 = tpu.concatenate %36, %66 in 1 : vector<16x16xf32>, vector<16x16xf32> -> vector<16x32xf32>
    %77 = arith.addf %75, %76 : vector<16x32xf32>
    %c0_31 = arith.constant 0 : index
    %c0_32 = arith.constant 0 : index
    %78 = vector.load %arg10[%c0_31, %c0_32] : memref<16x32xf32, #tpu.memory_space<vmem>>, vector<16x32xf32>
    tpu.vector_store %arg10[%c0_31, %c0_32], %77 {strides = array<i32>} : memref<16x32xf32, #tpu.memory_space<vmem>>, vector<16x32xf32>,
    %c0_i32_33 = arith.constant 0 : i32
    %79 = arith.cmpi eq, %arg1, %c0_i32_33 : i32
    %80 = arith.extui %79 : i1 to i32
    %c0_i32_34 = arith.constant 0 : i32
    %81 = arith.cmpi ne, %80, %c0_i32_34 : i32
    scf.if %81 {
      %c0_35 = arith.constant 0 : index
      %c0_36 = arith.constant 0 : index
      %82 = vector.load %arg9[%c0_35, %c0_36] : memref<16x2xf32, #tpu.memory_space<vmem>>, vector<16x2xf32>
      %cst_37 = arith.constant 9.99999968E-21 : f32
      %83 = vector.broadcast %cst_37 : f32 to vector<16x2xf32>
      %84 = arith.maximumf %82, %83 : vector<16x2xf32>
      %85 = tpu.reciprocal %84 {approx = true} : vector<16x2xf32> -> vector<16x2xf32>
      %86 = vector.extract_strided_slice %85 {offsets = [0, 0], sizes = [16, 1], strides = [1, 1]} : vector<16x2xf32> to vector<16x1xf32>
      %87 = vector.shape_cast %86 : vector<16x1xf32> to vector<16x1xf32>
      %88 = vector.broadcast %87 : vector<16x1xf32> to vector<16x16xf32>
      %89 = vector.extract_strided_slice %85 {offsets = [0, 1], sizes = [16, 1], strides = [1, 1]} : vector<16x2xf32> to vector<16x1xf32>
      %90 = vector.shape_cast %89 : vector<16x1xf32> to vector<16x1xf32>
      %91 = vector.broadcast %90 : vector<16x1xf32> to vector<16x16xf32>
      %92 = tpu.concatenate %88, %91 in 1 : vector<16x16xf32>, vector<16x16xf32> -> vector<16x32xf32>
      %c0_38 = arith.constant 0 : index
      %c0_39 = arith.constant 0 : index
      %93 = vector.load %arg10[%c0_38, %c0_39] : memref<16x32xf32, #tpu.memory_space<vmem>>, vector<16x32xf32>
      %94 = arith.mulf %93, %92 : vector<16x32xf32>
      %c0_40 = arith.constant 0 : index
      %c0_41 = arith.constant 0 : index
      %95 = vector.load %arg6[%c0_40, %c0_41] : memref<1x32xf32, #tpu.memory_space<vmem>>, vector<1x32xf32>
      %96 = vector.broadcast %95 : vector<1x32xf32> to vector<16x32xf32>
      %97 = arith.addf %94, %96 : vector<16x32xf32>
      %cst_42 = arith.constant 0.000000e+00 : f32
      %98 = vector.broadcast %cst_42 : f32 to vector<16x32xf32>
      %99 = arith.maximumf %97, %98 : vector<16x32xf32>
      %100 = arith.truncf %99 : vector<16x32xf32> to vector<16x32xbf16>
      %c0_43 = arith.constant 0 : index
      %c0_44 = arith.constant 0 : index
      %101 = vector.load %arg7[%c0_43, %c0_44] : memref<16x32xbf16, #tpu.memory_space<vmem>>, vector<16x32xbf16>
      tpu.vector_store %arg7[%c0_43, %c0_44], %100 {strides = array<i32>} : memref<16x32xbf16, #tpu.memory_space<vmem>>, vector<16x32xbf16>,
    } else {
    }
    return
  }
  func.func @transform_0(%arg0: i32, %arg1: i32) -> (i32, i32) {
    %c0_i32 = arith.constant 0 : i32
    return %arg0, %arg1 : i32, i32
  }
  func.func @transform_1(%arg0: i32, %arg1: i32) -> (i32, i32) {
    %c0_i32 = arith.constant 0 : i32
    %c0_i32_0 = arith.constant 0 : i32
    return %arg0, %c0_i32 : i32, i32
  }
  func.func @transform_2(%arg0: i32, %arg1: i32) -> (i32, i32) {
    %c0_i32 = arith.constant 0 : i32
    %c0_i32_0 = arith.constant 0 : i32
    return %c0_i32, %arg1 : i32, i32
  }
  func.func @transform_3(%arg0: i32, %arg1: i32) -> (i32, i32) {
    %c0_i32 = arith.constant 0 : i32
    %c0_i32_0 = arith.constant 0 : i32
    return %arg1, %c0_i32 : i32, i32
  }
  func.func @transform_4(%arg0: i32, %arg1: i32) -> (i32, i32) {
    %c0_i32 = arith.constant 0 : i32
    %c0_i32_0 = arith.constant 0 : i32
    %c0_i32_1 = arith.constant 0 : i32
    return %c0_i32, %c0_i32_0 : i32, i32
  }
  func.func @transform_5(%arg0: i32, %arg1: i32) -> (i32, i32) {
    %c0_i32 = arith.constant 0 : i32
    %c0_i32_0 = arith.constant 0 : i32
    return %arg0, %c0_i32 : i32, i32
  }
}

module attributes {stable_mosaic.version = 11 : i64} {
  func.func @_proj_kernel(%arg0: i32, %arg1: memref<16x32xbf16, #tpu.memory_space<vmem>>, %arg2: memref<32x16xbf16, #tpu.memory_space<vmem>>, %arg3: memref<16x2xbf16, #tpu.memory_space<vmem>>, %arg4: memref<16x16xbf16, #tpu.memory_space<vmem>>, %arg5: memref<16x2xf32, #tpu.memory_space<vmem>>) attributes {dimension_semantics = [#tpu.dimension_semantics<parallel>], iteration_bounds = array<i64: 2>, scalar_prefetch = 0 : i64, scratch_operands = 0 : i64, tpu.core_type = #tpu.core_type<tc>, window_params = [{transform_indices = @transform_0, window_bounds = array<i64: 16, 32>}, {pipeline_mode = #tpu.pipeline_mode<synchronous>, transform_indices = @transform_1, window_bounds = array<i64: 32, 16>}, {pipeline_mode = #tpu.pipeline_mode<synchronous>, transform_indices = @transform_2, window_bounds = array<i64: 16, 2>}, {transform_indices = @transform_3, window_bounds = array<i64: 16, 16>}, {transform_indices = @transform_4, window_bounds = array<i64: 16, 2>}]} {
    %c0 = arith.constant 0 : index
    %c0_0 = arith.constant 0 : index
    %0 = vector.load %arg1[%c0, %c0_0] : memref<16x32xbf16, #tpu.memory_space<vmem>>, vector<16x32xbf16>
    %c0_1 = arith.constant 0 : index
    %c0_2 = arith.constant 0 : index
    %1 = vector.load %arg2[%c0_1, %c0_2] : memref<32x16xbf16, #tpu.memory_space<vmem>>, vector<32x16xbf16>
    %cst = arith.constant dense<0.000000e+00> : vector<16x16xf32>
    %2 = tpu.matmul %0, %1, %cst {dimension_numbers = #tpu.dot_dimension_numbers<[1], [0], [0], [1], [0, 0, 1, 1], [], []>} : vector<16x32xbf16>, vector<32x16xbf16>, vector<16x16xf32> -> vector<16x16xf32>
    %3 = arith.truncf %2 : vector<16x16xf32> to vector<16x16xbf16>
    %c0_3 = arith.constant 0 : index
    %c0_4 = arith.constant 0 : index
    %4 = vector.load %arg4[%c0_3, %c0_4] : memref<16x16xbf16, #tpu.memory_space<vmem>>, vector<16x16xbf16>
    tpu.vector_store %arg4[%c0_3, %c0_4], %3 {strides = array<i32>} : memref<16x16xbf16, #tpu.memory_space<vmem>>, vector<16x16xbf16>,
    %c0_5 = arith.constant 0 : index
    %c0_6 = arith.constant 0 : index
    %5 = vector.load %arg3[%c0_5, %c0_6] : memref<16x2xbf16, #tpu.memory_space<vmem>>, vector<16x2xbf16>
    %cst_7 = arith.constant dense<0.000000e+00> : vector<16x2xf32>
    %6 = tpu.matmul %3, %5, %cst_7 {dimension_numbers = #tpu.dot_dimension_numbers<[1], [0], [0], [1], [0, 0, 1, 1], [], []>} : vector<16x16xbf16>, vector<16x2xbf16>, vector<16x2xf32> -> vector<16x2xf32>
    %c0_8 = arith.constant 0 : index
    %c0_9 = arith.constant 0 : index
    %7 = vector.load %arg5[%c0_8, %c0_9] : memref<16x2xf32, #tpu.memory_space<vmem>>, vector<16x2xf32>
    tpu.vector_store %arg5[%c0_8, %c0_9], %6 {strides = array<i32>} : memref<16x2xf32, #tpu.memory_space<vmem>>, vector<16x2xf32>,
    return
  }
  func.func @transform_0(%arg0: i32) -> (i32, i32) {
    %c0_i32 = arith.constant 0 : i32
    %c0_i32_0 = arith.constant 0 : i32
    return %arg0, %c0_i32 : i32, i32
  }
  func.func @transform_1(%arg0: i32) -> (i32, i32) {
    %c0_i32 = arith.constant 0 : i32
    %c0_i32_0 = arith.constant 0 : i32
    %c0_i32_1 = arith.constant 0 : i32
    return %c0_i32, %c0_i32_0 : i32, i32
  }
  func.func @transform_2(%arg0: i32) -> (i32, i32) {
    %c0_i32 = arith.constant 0 : i32
    %c0_i32_0 = arith.constant 0 : i32
    %c0_i32_1 = arith.constant 0 : i32
    return %c0_i32, %c0_i32_0 : i32, i32
  }
  func.func @transform_3(%arg0: i32) -> (i32, i32) {
    %c0_i32 = arith.constant 0 : i32
    %c0_i32_0 = arith.constant 0 : i32
    return %arg0, %c0_i32 : i32, i32
  }
  func.func @transform_4(%arg0: i32) -> (i32, i32) {
    %c0_i32 = arith.constant 0 : i32
    %c0_i32_0 = arith.constant 0 : i32
    return %arg0, %c0_i32 : i32, i32
  }
}

module attributes {stable_mosaic.version = 11 : i64} {
  func.func @_attn_kernel(%arg0: i32, %arg1: i32, %arg2: memref<16x32xbf16, #tpu.memory_space<vmem>>, %arg3: memref<16x1xf32, #tpu.memory_space<vmem>>, %arg4: memref<1x32xf32, #tpu.memory_space<vmem>>, %arg5: memref<32x16xbf16, #tpu.memory_space<vmem>>, %arg6: memref<1x16xf32, #tpu.memory_space<vmem>>, %arg7: memref<16x16xf32, #tpu.memory_space<vmem>>, %arg8: memref<16x1xf32, #tpu.memory_space<vmem>>, %arg9: memref<16x1xf32, #tpu.memory_space<vmem>>, %arg10: memref<16x16xf32, #tpu.memory_space<vmem>>) attributes {dimension_semantics = [#tpu.dimension_semantics<parallel>, #tpu.dimension_semantics<arbitrary>], iteration_bounds = array<i64: 2, 1>, scalar_prefetch = 0 : i64, scratch_operands = 3 : i64, tpu.core_type = #tpu.core_type<tc>, window_params = [{transform_indices = @transform_0, window_bounds = array<i64: 16, 32>}, {transform_indices = @transform_1, window_bounds = array<i64: 16, 1>}, {transform_indices = @transform_2, window_bounds = array<i64: 1, 32>}, {transform_indices = @transform_3, window_bounds = array<i64: 32, 16>}, {pipeline_mode = #tpu.pipeline_mode<synchronous>, transform_indices = @transform_4, window_bounds = array<i64: 1, 16>}, {transform_indices = @transform_5, window_bounds = array<i64: 16, 16>}]} {
    %c0_i32 = arith.constant 0 : i32
    %0 = arith.cmpi eq, %arg1, %c0_i32 : i32
    %1 = arith.extui %0 : i1 to i32
    %c0_i32_0 = arith.constant 0 : i32
    %2 = arith.cmpi ne, %1, %c0_i32_0 : i32
    scf.if %2 {
      %cst_27 = arith.constant -1.000000e+30 : f32
      %44 = vector.broadcast %cst_27 : f32 to vector<16x1xf32>
      %c0_28 = arith.constant 0 : index
      %c0_29 = arith.constant 0 : index
      %45 = vector.load %arg8[%c0_28, %c0_29] : memref<16x1xf32, #tpu.memory_space<vmem>>, vector<16x1xf32>
      tpu.vector_store %arg8[%c0_28, %c0_29], %44 {strides = array<i32>} : memref<16x1xf32, #tpu.memory_space<vmem>>, vector<16x1xf32>,
      %cst_30 = arith.constant 0.000000e+00 : f32
      %46 = vector.broadcast %cst_30 : f32 to vector<16x1xf32>
      %c0_31 = arith.constant 0 : index
      %c0_32 = arith.constant 0 : index
      %47 = vector.load %arg9[%c0_31, %c0_32] : memref<16x1xf32, #tpu.memory_space<vmem>>, vector<16x1xf32>
      tpu.vector_store %arg9[%c0_31, %c0_32], %46 {strides = array<i32>} : memref<16x1xf32, #tpu.memory_space<vmem>>, vector<16x1xf32>,
      %cst_33 = arith.constant 0.000000e+00 : f32
      %48 = vector.broadcast %cst_33 : f32 to vector<16x16xf32>
      %c0_34 = arith.constant 0 : index
      %c0_35 = arith.constant 0 : index
      %49 = vector.load %arg10[%c0_34, %c0_35] : memref<16x16xf32, #tpu.memory_space<vmem>>, vector<16x16xf32>
      tpu.vector_store %arg10[%c0_34, %c0_35], %48 {strides = array<i32>} : memref<16x16xf32, #tpu.memory_space<vmem>>, vector<16x16xf32>,
    } else {
    }
    %c0 = arith.constant 0 : index
    %c0_1 = arith.constant 0 : index
    %3 = vector.load %arg2[%c0, %c0_1] : memref<16x32xbf16, #tpu.memory_space<vmem>>, vector<16x32xbf16>
    %cst = arith.constant 0.000000e+00 : bf16
    %4 = vector.broadcast %cst : bf16 to vector<16x32xbf16>
    %5 = arith.cmpf ogt, %3, %4 : vector<16x32xbf16>
    %c0_2 = arith.constant 0 : index
    %c0_3 = arith.constant 0 : index
    %6 = vector.load %arg5[%c0_2, %c0_3] : memref<32x16xbf16, #tpu.memory_space<vmem>>, vector<32x16xbf16>
    %c0_4 = arith.constant 0 : index
    %c0_5 = arith.constant 0 : index
    %7 = vector.load %arg8[%c0_4, %c0_5] : memref<16x1xf32, #tpu.memory_space<vmem>>, vector<16x1xf32>
    %c0_6 = arith.constant 0 : index
    %c0_7 = arith.constant 0 : index
    %8 = vector.load %arg9[%c0_6, %c0_7] : memref<16x1xf32, #tpu.memory_space<vmem>>, vector<16x1xf32>
    %c0_8 = arith.constant 0 : index
    %c0_9 = arith.constant 0 : index
    %9 = vector.load %arg3[%c0_8, %c0_9] : memref<16x1xf32, #tpu.memory_space<vmem>>, vector<16x1xf32>
    %c0_10 = arith.constant 0 : index
    %c0_11 = arith.constant 0 : index
    %10 = vector.load %arg4[%c0_10, %c0_11] : memref<1x32xf32, #tpu.memory_space<vmem>>, vector<1x32xf32>
    %11 = vector.broadcast %9 : vector<16x1xf32> to vector<16x32xf32>
    %12 = vector.broadcast %10 : vector<1x32xf32> to vector<16x32xf32>
    %13 = arith.addf %11, %12 : vector<16x32xf32>
    %cst_12 = arith.constant 2.000000e-01 : f32
    %14 = vector.broadcast %cst_12 : f32 to vector<16x32xf32>
    %15 = arith.mulf %14, %13 : vector<16x32xf32>
    %16 = arith.maximumf %13, %15 : vector<16x32xf32>
    %cst_13 = arith.constant -1.000000e+30 : f32
    %17 = vector.broadcast %cst_13 : f32 to vector<16x32xf32>
    %18 = arith.select %5, %16, %17 : vector<16x32xi1>, vector<16x32xf32>
    %cst_14 = arith.constant dense<0xFF800000> : vector<16xf32>
    %19 = vector.multi_reduction <maximumf>, %18, %cst_14 [1] : vector<16x32xf32> to vector<16xf32>
    %20 = vector.shape_cast %19 : vector<16xf32> to vector<16x1xf32>
    %21 = arith.maximumf %7, %20 : vector<16x1xf32>
    %22 = arith.subf %7, %21 : vector<16x1xf32>
    %23 = math.exp %22 : vector<16x1xf32>
    %24 = vector.broadcast %21 : vector<16x1xf32> to vector<16x32xf32>
    %25 = arith.subf %18, %24 : vector<16x32xf32>
    %26 = math.exp %25 : vector<16x32xf32>
    %27 = arith.mulf %23, %8 : vector<16x1xf32>
    %cst_15 = arith.constant dense<0.000000e+00> : vector<16xf32>
    %28 = vector.multi_reduction <add>, %26, %cst_15 [1] : vector<16x32xf32> to vector<16xf32>
    %29 = vector.shape_cast %28 : vector<16xf32> to vector<16x1xf32>
    %30 = arith.addf %27, %29 : vector<16x1xf32>
    %31 = arith.truncf %26 : vector<16x32xf32> to vector<16x32xbf16>
    %cst_16 = arith.constant dense<0.000000e+00> : vector<16x16xf32>
    %32 = tpu.matmul %31, %6, %cst_16 {dimension_numbers = #tpu.dot_dimension_numbers<[1], [0], [0], [1], [0, 0, 1, 1], [], []>} : vector<16x32xbf16>, vector<32x16xbf16>, vector<16x16xf32> -> vector<16x16xf32>
    %33 = vector.shape_cast %23 : vector<16x1xf32> to vector<16x1xf32>
    %34 = vector.broadcast %33 : vector<16x1xf32> to vector<16x16xf32>
    %c0_17 = arith.constant 0 : index
    %c0_18 = arith.constant 0 : index
    %35 = vector.load %arg8[%c0_17, %c0_18] : memref<16x1xf32, #tpu.memory_space<vmem>>, vector<16x1xf32>
    tpu.vector_store %arg8[%c0_17, %c0_18], %21 {strides = array<i32>} : memref<16x1xf32, #tpu.memory_space<vmem>>, vector<16x1xf32>,
    %c0_19 = arith.constant 0 : index
    %c0_20 = arith.constant 0 : index
    %36 = vector.load %arg9[%c0_19, %c0_20] : memref<16x1xf32, #tpu.memory_space<vmem>>, vector<16x1xf32>
    tpu.vector_store %arg9[%c0_19, %c0_20], %30 {strides = array<i32>} : memref<16x1xf32, #tpu.memory_space<vmem>>, vector<16x1xf32>,
    %c0_21 = arith.constant 0 : index
    %c0_22 = arith.constant 0 : index
    %37 = vector.load %arg10[%c0_21, %c0_22] : memref<16x16xf32, #tpu.memory_space<vmem>>, vector<16x16xf32>
    %38 = arith.mulf %34, %37 : vector<16x16xf32>
    %39 = arith.addf %38, %32 : vector<16x16xf32>
    %c0_23 = arith.constant 0 : index
    %c0_24 = arith.constant 0 : index
    %40 = vector.load %arg10[%c0_23, %c0_24] : memref<16x16xf32, #tpu.memory_space<vmem>>, vector<16x16xf32>
    tpu.vector_store %arg10[%c0_23, %c0_24], %39 {strides = array<i32>} : memref<16x16xf32, #tpu.memory_space<vmem>>, vector<16x16xf32>,
    %c0_i32_25 = arith.constant 0 : i32
    %41 = arith.cmpi eq, %arg1, %c0_i32_25 : i32
    %42 = arith.extui %41 : i1 to i32
    %c0_i32_26 = arith.constant 0 : i32
    %43 = arith.cmpi ne, %42, %c0_i32_26 : i32
    scf.if %43 {
      %c0_27 = arith.constant 0 : index
      %c0_28 = arith.constant 0 : index
      %44 = vector.load %arg9[%c0_27, %c0_28] : memref<16x1xf32, #tpu.memory_space<vmem>>, vector<16x1xf32>
      %cst_29 = arith.constant 9.99999968E-21 : f32
      %45 = vector.broadcast %cst_29 : f32 to vector<16x1xf32>
      %46 = arith.maximumf %44, %45 : vector<16x1xf32>
      %47 = tpu.reciprocal %46 {approx = true} : vector<16x1xf32> -> vector<16x1xf32>
      %48 = vector.shape_cast %47 : vector<16x1xf32> to vector<16x1xf32>
      %49 = vector.broadcast %48 : vector<16x1xf32> to vector<16x16xf32>
      %c0_30 = arith.constant 0 : index
      %c0_31 = arith.constant 0 : index
      %50 = vector.load %arg10[%c0_30, %c0_31] : memref<16x16xf32, #tpu.memory_space<vmem>>, vector<16x16xf32>
      %51 = arith.mulf %50, %49 : vector<16x16xf32>
      %c0_32 = arith.constant 0 : index
      %c0_33 = arith.constant 0 : index
      %52 = vector.load %arg6[%c0_32, %c0_33] : memref<1x16xf32, #tpu.memory_space<vmem>>, vector<1x16xf32>
      %53 = vector.broadcast %52 : vector<1x16xf32> to vector<16x16xf32>
      %54 = arith.addf %51, %53 : vector<16x16xf32>
      %55 = arith.mulf %54, %54 : vector<16x16xf32>
      %cst_34 = arith.constant dense<0.000000e+00> : vector<16xf32>
      %56 = vector.multi_reduction <add>, %55, %cst_34 [1] : vector<16x16xf32> to vector<16xf32>
      %57 = vector.shape_cast %56 : vector<16xf32> to vector<16x1xf32>
      %cst_35 = arith.constant 1.000000e-24 : f32
      %58 = vector.broadcast %cst_35 : f32 to vector<16x1xf32>
      %59 = arith.maximumf %57, %58 : vector<16x1xf32>
      %60 = math.rsqrt %59 : vector<16x1xf32>
      %61 = vector.broadcast %60 : vector<16x1xf32> to vector<16x16xf32>
      %62 = arith.mulf %54, %61 : vector<16x16xf32>
      %c0_36 = arith.constant 0 : index
      %c0_37 = arith.constant 0 : index
      %63 = vector.load %arg7[%c0_36, %c0_37] : memref<16x16xf32, #tpu.memory_space<vmem>>, vector<16x16xf32>
      tpu.vector_store %arg7[%c0_36, %c0_37], %62 {strides = array<i32>} : memref<16x16xf32, #tpu.memory_space<vmem>>, vector<16x16xf32>,
    } else {
    }
    return
  }
  func.func @transform_0(%arg0: i32, %arg1: i32) -> (i32, i32) {
    %c0_i32 = arith.constant 0 : i32
    return %arg0, %arg1 : i32, i32
  }
  func.func @transform_1(%arg0: i32, %arg1: i32) -> (i32, i32) {
    %c0_i32 = arith.constant 0 : i32
    %c0_i32_0 = arith.constant 0 : i32
    return %arg0, %c0_i32 : i32, i32
  }
  func.func @transform_2(%arg0: i32, %arg1: i32) -> (i32, i32) {
    %c0_i32 = arith.constant 0 : i32
    %c0_i32_0 = arith.constant 0 : i32
    return %c0_i32, %arg1 : i32, i32
  }
  func.func @transform_3(%arg0: i32, %arg1: i32) -> (i32, i32) {
    %c0_i32 = arith.constant 0 : i32
    %c0_i32_0 = arith.constant 0 : i32
    return %arg1, %c0_i32 : i32, i32
  }
  func.func @transform_4(%arg0: i32, %arg1: i32) -> (i32, i32) {
    %c0_i32 = arith.constant 0 : i32
    %c0_i32_0 = arith.constant 0 : i32
    %c0_i32_1 = arith.constant 0 : i32
    return %c0_i32, %c0_i32_0 : i32, i32
  }
  func.func @transform_5(%arg0: i32, %arg1: i32) -> (i32, i32) {
    %c0_i32 = arith.constant 0 : i32
    %c0_i32_0 = arith.constant 0 : i32
    return %arg0, %c0_i32 : i32, i32
  }
}

</mosaic_0001>

<bundles_post_ra>
// kernel: _lambda_.6
= control target key start
LH: loop header
LB: loop body
LE: loop exit
PB: predicated region body
PF: predicated region fallthrough
CT: control target
= control target key end

     0   :  { %s526_s15 = smov 0   ;;  %s555_s0 = inlined_call_operand.vmem [shape: f32[32,16], index: 0, kind: input, shape index: {}]   ;;  %s556_s1 = inlined_call_operand.vmem [shape: bf16[16,32], index: 1, kind: input, shape index: {}]   ;;  %s557_s2 = inlined_call_operand.vmem [shape: bf16[32,4], index: 2, kind: input, shape index: {}]   ;;  %s558_s3 = inlined_call_operand.vmem [shape: bf16[32,32], index: 3, kind: output, shape index: {0}]   ;;  %s559_s4 = inlined_call_operand.vmem [shape: f32[32,4], index: 4, kind: output, shape index: {1}]  }
   0x1 LB: > { %s437_s16 = sadd.s32 4294967295, %s497_s15   ;;  %p441_p0 = scmp.ge.s32.totalorder %s497_s15, 1  ;;  %s497_s15 = sphi %s526_s15, %s15_s15  }
   0x2   : > { %p166_p1 = scmp.lt.s32.totalorder %s497_s15, 3 }
   0x4   : > { %p167_p2 = pnand %p441_p0, %p166_p1 }
   0x5   : > { %v488_v0 = vld [vmem:[%s556_s1] sm:$0xff] (!%p167_p2)   ;;  %v499_v1 = vmov (!%p167_p2), 0.0   ;;  %s442_s19 = sshll.u32 (!%p167_p2), %s437_s16, 1  ;;  %vm500_vm0 = vmmov (!%p167_p2), 0   ;;  %vm227_vm1 = vcmask (!%p167_p2), 130048   ;;  %v490_v6 = vld [vmem:[%s557_s2 + $0x8] sm:$0xff] (!%p167_p2)  }
   0x6   : > { %170 = sbr.rel (%p167_p2) target bundleno = 450 (0x1c2), region = 32  ;;  %464 = vmatprep.subr.bf16.mxu0 (!%p167_p2), %v499_v1  ;;  %470 = vmatprep.subr.bf16.mxu1 (!%p167_p2), %v499_v1  ;;  %v489_v2 = vld [vmem:[%s557_s2] sm:$0xff] (!%p167_p2)   ;;  %p198_p3 = scmp.lt.s32.totalorder (!%p167_p2), %s442_s19, 3  ;;  %vm280_vm2 = vcmask (!%p167_p2), 257024   ;;  %vm299_vm3 = vcmask (!%p167_p2), 261120   ;;  %vm344_vm4 = vcmask (!%p167_p2), 31744  }
   0x7   : > { %465 = vmatpush3.bf16.msra.mxu0 (!%p167_p2), %v488_v0  ;;  %466 = vmatprep.mubr.msk.bf16.mxu0 (!%p167_p2), %vm500_vm0, %v499_v1 }
   0x8   : > { %471 = vmatpush3.bf16.msra.mxu1 (!%p167_p2), %v489_v2  ;;  %474 = vmatprep.mubr.msk.bf16.mxu1 (!%p167_p2), %vm500_vm0, %v499_v1 }
   0x9   : > { %472 = vmatprep.subr.bf16.mxu1 (!%p167_p2), %v499_v1 }
   0xc   : > { %473 = vmatpush3.bf16.msra.mxu1 (!%p167_p2), %v490_v6 }
   0xd   : > { %s561_s19 = smov (!%p198_p3, %s442_s19), 3 }
   0xe   : > { %s443_s22 = sshll.u32 %s561_s19, 3  ;;  %s445_s28 = sshll.u32 %s561_s19, 2 }
   0xf   : > { %s201_s25 = scalar_lea.vmem %s555_s0, %s443_s22  ;;  %s207_s5 = scalar_lea.vmem %s558_s3, %s445_s28 }
  0x10   : > { %v216_v3 = vld [vmem:[%s201_s25] sm:$0xff]  ;;  %v217_v4 = vld [vmem:[%s201_s25 + $0x8] sm:$0xff]  ;;  %s213_s8 = scalar_lea.vmem %s559_s4, %s443_s22 }
  0x11   : > { %v218_v5 = vpack.c.bf16 %v217_v4, %v216_v3 }
  0x13   : > { %467 = vmatmul.mubr.msk.bf16.vlgmr.msra.gmra.mrb[0].mxu0 %vm227_vm1, %v218_v5 }
  0xe6   : > { %v265_v7 = vpop.f32.mrb[0].mxu0 }
  0xe7   : > { %v457_v8 = vpack.c.bf16 %v265_v7, %v265_v7  ;;  %v468_v9 = vpop.f32.mrb[1].mxu0 }
  0xe8   : > { %v268_v10 = vpop.f32.mrb[2].mxu0 }
  0xe9   : > { %281 = vst.msk [vmem:[%s207_s5] sm:$0xf] %vm280_vm2, %v457_v8  ;;  %v272_v11 = vpack.c.bf16 %v268_v10, %v265_v7  ;;  %v458_v12 = vpack.c.bf16 %v268_v10, %v268_v10  ;;  %v469_v13 = vpop.f32.mrb[3].mxu0 }
  0xeb   : > { %282 = vst.msk [vmem:[%s207_s5 + $0x4] sm:$0xf] %vm280_vm2, %v458_v12  ;;  %475 = vmatmul.mubr.msk.bf16.vlgmr.msra.gmra.mrb[0].mxu1 %vm299_vm3, %v272_v11 }
 0x1be   : > { %v337_v14 = vpop.f32.mrb[0].mxu1 }
 0x1bf   : > { %345 = vst.msk [vmem:[%s213_s8] sm:$0xff] %vm344_vm4, %v337_v14  ;;  %v476_v15 = vpop.f32.mrb[1].mxu1 }
 0x1c0   : > { %v340_v16 = vpop.f32.mrb[2].mxu1 }
 0x1c1   : > { %346 = vst.msk [vmem:[%s213_s8 + $0x8] sm:$0xff] %vm344_vm4, %v340_v16  ;;  %v477_v17 = vpop.f32.mrb[3].mxu1 }
 0x1c2 PF: > { %s15_s15 = sadd.s32 1, %s497_s15  }
 0x1c3   : > { %p12_p4 = scmp.ge.s32.totalorder %s15_s15, 4  }
 0x1c5   :  { %14 = sbr.rel (!%p12_p4) target bundleno = 1 (0x1), region = 74 }

// kernel: _lambda_.10
= control target key start
LH: loop header
LB: loop body
LE: loop exit
PB: predicated region body
PF: predicated region fallthrough
CT: control target
= control target key end

     0   :  { %s532_s15 = smov 0   ;;  %s561_s0 = inlined_call_operand.vmem [shape: bf16[32,32], index: 0, kind: input, shape index: {}]   ;;  %s562_s1 = inlined_call_operand.vmem [shape: bf16[32,16], index: 1, kind: input, shape index: {}]   ;;  %s563_s2 = inlined_call_operand.vmem [shape: bf16[16,2], index: 2, kind: input, shape index: {}]   ;;  %s564_s3 = inlined_call_operand.vmem [shape: bf16[32,16], index: 3, kind: output, shape index: {0}]   ;;  %s565_s4 = inlined_call_operand.vmem [shape: f32[32,2], index: 4, kind: output, shape index: {1}]  }
   0x1 LB: > { %s441_s16 = sadd.s32 4294967295, %s503_s15   ;;  %p445_p0 = scmp.ge.s32.totalorder %s503_s15, 1  ;;  %s503_s15 = sphi %s532_s15, %s15_s15  }
   0x2   : > { %p166_p1 = scmp.lt.s32.totalorder %s503_s15, 3 }
   0x4   : > { %p167_p2 = pnand %p445_p0, %p166_p1 }
   0x5   : > { %v493_v0 = vld [vmem:[%s562_s1] sm:$0xff] (!%p167_p2)   ;;  %v505_v1 = vmov (!%p167_p2), 0.0   ;;  %v494_v2 = vld [vmem:[%s562_s1 + $0x8] sm:$0xff] (!%p167_p2)   ;;  %vm506_vm0 = vmmov (!%p167_p2), 0   ;;  %s446_s21 = sshll.u32 (!%p167_p2), %s441_s16, 1  ;;  %vm239_vm1 = vcmask (!%p167_p2), 261120  }
   0x6   : > { %170 = sbr.rel (%p167_p2) target bundleno = 448 (0x1c0), region = 32  ;;  %469 = vmatprep.subr.bf16.mxu0 (!%p167_p2), %v505_v1  ;;  %477 = vmatprep.subr.bf16.mxu1 (!%p167_p2), %v505_v1  ;;  %p198_p3 = scmp.lt.s32.totalorder (!%p167_p2), %s446_s21, 3  ;;  %v496_v4 = vld [vmem:[%s563_s2] sm:$0xff] (!%p167_p2)   ;;  %vm292_vm2 = vcmask (!%p167_p2), 125952   ;;  %vm303_vm3 = vcmask (!%p167_p2), 130048   ;;  %vm348_vm4 = vcmask (!%p167_p2), 15360  }
   0x7   : > { %470 = vmatpush3.bf16.msra.mxu0 (!%p167_p2), %v493_v0  ;;  %473 = vmatprep.mubr.msk.bf16.mxu0 (!%p167_p2), %vm506_vm0, %v505_v1 }
   0x8   : > { %471 = vmatprep.subr.bf16.mxu0 (!%p167_p2), %v505_v1  ;;  %479 = vmatprep.mubr.msk.bf16.mxu1 (!%p167_p2), %vm506_vm0, %v505_v1 }
   0x9   : > { %478 = vmatpush3.bf16.msra.mxu1 (!%p167_p2), %v496_v4 }
   0xb   : > { %472 = vmatpush3.bf16.msra.mxu0 (!%p167_p2), %v494_v2 }
   0xd   : > { %s567_s21 = smov (!%p198_p3, %s446_s21), 3 }
   0xe   : > { %s447_s22 = sshll.u32 %s567_s21, 2  ;;  %s451_s5 = sshll.u32 %s567_s21, 3 }
   0xf   : > { %s201_s25 = scalar_lea.vmem %s561_s0, %s447_s22  ;;  %s207_s30 = scalar_lea.vmem %s564_s3, %s447_s22 }
  0x10   : > { %v495_v3 = vld [vmem:[%s201_s25] sm:$0xff]   ;;  %s213_s8 = scalar_lea.vmem %s565_s4, %s451_s5 }
  0x11   : > { %474 = vmatmul.mubr.msk.bf16.vlgmr.msra.gmra.mrb[0].mxu0 %vm239_vm1, %v495_v3 }
  0xe4   : > { %v277_v5 = vpop.f32.mrb[0].mxu0 }
  0xe5   : > { %v462_v6 = vpack.c.bf16 %v277_v5, %v277_v5  ;;  %v475_v7 = vpop.f32.mrb[1].mxu0 }
  0xe6   : > { %v280_v8 = vpop.f32.mrb[2].mxu0 }
  0xe7   : > { %293 = vst.msk [vmem:[%s207_s30] sm:$0xf] %vm292_vm2, %v462_v6  ;;  %v284_v9 = vpack.c.bf16 %v280_v8, %v277_v5  ;;  %v463_v10 = vpack.c.bf16 %v280_v8, %v280_v8  ;;  %v476_v11 = vpop.f32.mrb[3].mxu0 }
  0xe9   : > { %294 = vst.msk [vmem:[%s207_s30 + $0x4] sm:$0xf] %vm292_vm2, %v463_v10  ;;  %480 = vmatmul.mubr.msk.bf16.vlgmr.msra.gmra.mrb[0].mxu1 %vm303_vm3, %v284_v9 }
 0x1bc   : > { %v341_v12 = vpop.f32.mrb[0].mxu1 }
 0x1bd   : > { %349 = vst.msk [vmem:[%s213_s8] sm:$0xff] %vm348_vm4, %v341_v12  ;;  %v481_v13 = vpop.f32.mrb[1].mxu1 }
 0x1be   : > { %v344_v14 = vpop.f32.mrb[2].mxu1 }
 0x1bf   : > { %350 = vst.msk [vmem:[%s213_s8 + $0x8] sm:$0xff] %vm348_vm4, %v344_v14  ;;  %v482_v15 = vpop.f32.mrb[3].mxu1 }
 0x1c0 PF: > { %s15_s15 = sadd.s32 1, %s503_s15  }
 0x1c1   : > { %p12_p4 = scmp.ge.s32.totalorder %s15_s15, 4  }
 0x1c3   :  { %14 = sbr.rel (!%p12_p4) target bundleno = 1 (0x1), region = 74 }

// kernel: _lambda_.8
= control target key start
LH: loop header
LB: loop body
LE: loop exit
PB: predicated region body
PF: predicated region fallthrough
CT: control target
= control target key end

     0   :  { %s544_s15 = smov 0   ;;  %s578_s0 = inlined_call_operand.vmem [shape: bf16[32,32], index: 0, kind: input, shape index: {}]   ;;  %s579_s1 = inlined_call_operand.vmem [shape: bf16[32,32], index: 1, kind: input, shape index: {}]   ;;  %s580_s2 = inlined_call_operand.vmem [shape: bf16[32,4], index: 2, kind: input, shape index: {}]   ;;  %s581_s3 = inlined_call_operand.vmem [shape: bf16[32,32], index: 3, kind: output, shape index: {0}]   ;;  %s582_s4 = inlined_call_operand.vmem [shape: f32[32,4], index: 4, kind: output, shape index: {1}]  }
   0x1 LB: > { %s448_s16 = sadd.s32 4294967295, %s515_s15   ;;  %p452_p0 = scmp.ge.s32.totalorder %s515_s15, 1  ;;  %s515_s15 = sphi %s544_s15, %s15_s15  }
   0x2   : > { %p166_p1 = scmp.lt.s32.totalorder %s515_s15, 3 }
   0x4   : > { %p167_p2 = pnand %p452_p0, %p166_p1 }
   0x5   : > { %v504_v0 = vld [vmem:[%s579_s1] sm:$0xff] (!%p167_p2)   ;;  %v517_v1 = vmov (!%p167_p2), 0.0   ;;  %v505_v2 = vld [vmem:[%s579_s1 + $0x8] sm:$0xff] (!%p167_p2)   ;;  %vm518_vm0 = vmmov (!%p167_p2), 0   ;;  %s453_s21 = sshll.u32 (!%p167_p2), %s448_s16, 1  ;;  %vm239_vm1 = vcmask (!%p167_p2), 261120  }
   0x6   : > { %170 = sbr.rel (%p167_p2) target bundleno = 448 (0x1c0), region = 32  ;;  %478 = vmatprep.subr.bf16.mxu0 (!%p167_p2), %v517_v1  ;;  %486 = vmatprep.subr.bf16.mxu1 (!%p167_p2), %v517_v1  ;;  %p198_p3 = scmp.lt.s32.totalorder (!%p167_p2), %s453_s21, 3  ;;  %v507_v3 = vld [vmem:[%s580_s2] sm:$0xff] (!%p167_p2)   ;;  %v508_v5 = vld [vmem:[%s580_s2 + $0x8] sm:$0xff] (!%p167_p2)   ;;  %vm292_vm2 = vcmask (!%p167_p2), 257024   ;;  %vm355_vm3 = vcmask (!%p167_p2), 31744  }
   0x7   : > { %479 = vmatpush3.bf16.msra.mxu0 (!%p167_p2), %v504_v0  ;;  %482 = vmatprep.mubr.msk.bf16.mxu0 (!%p167_p2), %vm518_vm0, %v517_v1 }
   0x8   : > { %480 = vmatprep.subr.bf16.mxu0 (!%p167_p2), %v517_v1  ;;  %490 = vmatprep.mubr.msk.bf16.mxu1 (!%p167_p2), %vm518_vm0, %v517_v1 }
   0x9   : > { %487 = vmatpush3.bf16.msra.mxu1 (!%p167_p2), %v507_v3 }
   0xa   : > { %488 = vmatprep.subr.bf16.mxu1 (!%p167_p2), %v517_v1 }
   0xb   : > { %481 = vmatpush3.bf16.msra.mxu0 (!%p167_p2), %v505_v2 }
   0xd   : > { %s584_s21 = smov (!%p198_p3, %s453_s21), 3  ;;  %489 = vmatpush3.bf16.msra.mxu1 %v508_v5 }
   0xe   : > { %s454_s24 = sshll.u32 %s584_s21, 2  ;;  %s458_s7 = sshll.u32 %s584_s21, 3 }
   0xf   : > { %s201_s27 = scalar_lea.vmem %s578_s0, %s454_s24  ;;  %s207_s6 = scalar_lea.vmem %s581_s3, %s454_s24 }
  0x10   : > { %v506_v4 = vld [vmem:[%s201_s27] sm:$0xff]   ;;  %s213_s10 = scalar_lea.vmem %s582_s4, %s458_s7 }
  0x11   : > { %483 = vmatmul.mubr.msk.bf16.vlgmr.msra.gmra.mrb[0].mxu0 %vm239_vm1, %v506_v4 }
  0xe4   : > { %v277_v6 = vpop.f32.mrb[0].mxu0 }
  0xe5   : > { %v470_v7 = vpack.c.bf16 %v277_v6, %v277_v6  ;;  %v484_v8 = vpop.f32.mrb[1].mxu0 }
  0xe6   : > { %v280_v9 = vpop.f32.mrb[2].mxu0 }
  0xe7   : > { %293 = vst.msk [vmem:[%s207_s6] sm:$0xf] %vm292_vm2, %v470_v7  ;;  %v284_v10 = vpack.c.bf16 %v280_v9, %v277_v6  ;;  %v471_v11 = vpack.c.bf16 %v280_v9, %v280_v9  ;;  %v485_v12 = vpop.f32.mrb[3].mxu0 }
  0xe9   : > { %294 = vst.msk [vmem:[%s207_s6 + $0x4] sm:$0xf] %vm292_vm2, %v471_v11  ;;  %491 = vmatmul.mubr.msk.bf16.vlgmr.msra.gmra.mrb[0].mxu1 %vm239_vm1, %v284_v10 }
 0x1bc   : > { %v348_v13 = vpop.f32.mrb[0].mxu1 }
 0x1bd   : > { %356 = vst.msk [vmem:[%s213_s10] sm:$0xff] %vm355_vm3, %v348_v13  ;;  %v492_v14 = vpop.f32.mrb[1].mxu1 }
 0x1be   : > { %v351_v15 = vpop.f32.mrb[2].mxu1 }
 0x1bf   : > { %357 = vst.msk [vmem:[%s213_s10 + $0x8] sm:$0xff] %vm355_vm3, %v351_v15  ;;  %v493_v16 = vpop.f32.mrb[3].mxu1 }
 0x1c0 PF: > { %s15_s15 = sadd.s32 1, %s515_s15  }
 0x1c1   : > { %p12_p4 = scmp.ge.s32.totalorder %s15_s15, 4  }
 0x1c3   :  { %14 = sbr.rel (!%p12_p4) target bundleno = 1 (0x1), region = 74 }

// kernel: _lambda_.7
= control target key start
LH: loop header
LB: loop body
LE: loop exit
PB: predicated region body
PF: predicated region fallthrough
CT: control target
= control target key end

     0   :  { %s970_s18 = smov 0   ;;  %s972_s19 = smov 0   ;;  %s1108_s0 = inlined_call_operand.vmem [shape: bf16[32,32], index: 0, kind: input, shape index: {}]   ;;  %s1109_s1 = inlined_call_operand.vmem [shape: f32[32,2], index: 1, kind: input, shape index: {}]   ;;  %s1110_s2 = inlined_call_operand.vmem [shape: f32[2,32], index: 2, kind: input, shape index: {}]   ;;  %s1111_s3 = inlined_call_operand.vmem [shape: bf16[32,32], index: 3, kind: input, shape index: {}]   ;;  %s1112_s4 = inlined_call_operand.vmem [shape: f32[1,32], index: 4, kind: input, shape index: {}]   ;;  %s1113_s5 = inlined_call_operand.vmem [shape: bf16[32,32], index: 5, kind: output, shape index: {}]  }
   0x1   :  { %s974_s20 = smov 0  }
   0x2 LB: > { %s27_s21 = sadd.s32 1, %s927_s19  ;;  %p802_p0 = scmp.ge.s32.totalorder %s931_s20, 1  ;;  %s931_s20 = sphi %s974_s20, %s15_s20   ;;  %s927_s19 = sphi %s972_s19, %s1115_s19   ;;  %s923_s18 = sphi %s970_s18, %s1114_s18  }
   0x3   : > { %p29_p1 = scmp.ge.s32.totalorder %s27_s21, 2  ;;  %p236_p2 = scmp.lt.s32.totalorder %s931_s20, 3 }
   0x5   : > { %s1117_s21 = smov (%p29_p1, %s27_s21), 0  ;;  %p237_p3 = pnand %p802_p0, %p236_p2 }
   0x6   : > { %s803_s22 = sshll.u32 (!%p237_p3), %s923_s18, 1  ;;  %v933_v0 = vmov (!%p237_p3), 1   ;;  %v934_v1 = vmov (!%p237_p3), 0   ;;  %vm319_vm0 = vcmask (!%p237_p3), 15360   ;;  %v935_v4 = vmov (!%p237_p3), -1e+30  }
   0x7   : > { %240 = sbr.rel (%p237_p3) target bundleno = 805 (0x325), region = 40  ;;  %875 = vset.pattern.permute.xlu0 (!%p237_p3), %v933_v0  ;;  %p282_p4 = scmp.lt.s32.totalorder (!%p237_p3), %s803_s22, 3  ;;  %876 = vset.pattern.permute.xlu1 (!%p237_p3), %v934_v1  ;;  %320 = vst.msk [vmem:[#allocation2] sm:$0xff] (!%p237_p3), %vm319_vm0, %v935_v4  ;;  %321 = vst.msk [vmem:[#allocation2 + $0x8] sm:$0xff] (!%p237_p3), %vm319_vm0, %v935_v4  ;;  %v813_v8 = vld [vmem:[%s1110_s2 + $0x1] ss:$0 sm:$0xff] (!%p237_p3) }
   0x8   : > { %v809_v9 = vld [vmem:[%s1110_s2] ss:$0 sm:$0xff] (!%p237_p3)  ;;  %vm324_vm3 = vcmask (!%p237_p3), 261120   ;;  %v936_v38 = vmov (!%p237_p3), 0.0   ;;  %v888_v39 = vld [vmem:[%s1111_s3 + $0x8] sm:$0xff] (!%p237_p3)   ;;  %vm600_vm6 = vcmask (!%p237_p3), 7168  }
   0x9   : > { %v887_v37 = vld [vmem:[%s1111_s3] sm:$0xff] (!%p237_p3)   ;;  %836 = vmatprep.subr.bf16.mxu1 (!%p237_p3), %v936_v38  ;;  %322 = vst.msk [vmem:[#allocation3] sm:$0xff] (!%p237_p3), %vm319_vm0, %v936_v38  ;;  %323 = vst.msk [vmem:[#allocation3 + $0x8] sm:$0xff] (!%p237_p3), %vm319_vm0, %v936_v38  ;;  %828 = vmatprep.subr.bf16.mxu0 (!%p237_p3), %v936_v38  ;;  %s937_s14 = smov (!%p237_p3), 112   ;;  %vm938_vm7 = vmmov (!%p237_p3), 0   ;;  %s939_s15 = smov (!%p237_p3), 16  }
   0xa   : > { %325 = vst.msk [vmem:[#allocation4] sm:$0xff] (!%p237_p3), %vm324_vm3, %v936_v38  ;;  %326 = vst.msk [vmem:[#allocation4 + $0x8] sm:$0xff] (!%p237_p3), %vm324_vm3, %v936_v38  ;;  %829 = vmatpush3.bf16.msra.mxu0 (!%p237_p3), %v887_v37  ;;  %840 = vmatprep.mubr.msk.bf16.mxu1 (!%p237_p3), %vm938_vm7, %v936_v38  ;;  %vm610_vm8 = vcmask (!%p237_p3), 130048   ;;  %vm683_vm9 = vcmask (!%p237_p3), 257024  }
   0xb   : > { %830 = vmatprep.subr.bf16.mxu0 (!%p237_p3), %v936_v38  ;;  %832 = vmatprep.mubr.msk.bf16.mxu0 (!%p237_p3), %vm938_vm7, %v936_v38 }
   0xe   : > { %s1119_s22 = smov (!%p282_p4, %s803_s22), 3  ;;  %831 = vmatpush3.bf16.msra.mxu0 %v888_v39  ;;  %v1033_v40 = vld [vmem:[#allocation2] sm:$0xff]  ;;  %v1038_v43 = vld [vmem:[#allocation2 + $0x8] sm:$0xff] }
   0xf   : > { %s806_s23 = sshll.u32 %s1119_s22, 3  ;;  %s804_s27 = sshll.u32 %s1119_s22, 2 }
  0x10   : > { %s294_s26 = scalar_lea.vmem %s1109_s1, %s806_s23  ;;  %s288_s30 = scalar_lea.vmem %s1108_s0, %s804_s27 }
  0x11   : > { %v339_v2 = vld [vmem:[%s294_s26] sm:$0xff]  ;;  %v340_v3 = vld [vmem:[%s294_s26 + $0x8] sm:$0xff]  ;;  %s310_s24 = scalar_lea.vmem %s1113_s5, %s804_s27 }
  0x12   : > { %480 = vperm.xlu0 %875, %v339_v2   ;;  %344 = vperm.xlu1 %876, %v339_v2   ;;  %v327_v5 = vld [vmem:[%s288_s30] sm:$0xf]  ;;  %v328_v6 = vld [vmem:[%s288_s30 + $0x4] sm:$0xf] }
  0x13   : > { %vm329_vm1 = vcmp.gt.bf16.partialorder %v327_v5, 0  ;;  %vm330_vm2 = vcmp.gt.bf16.partialorder %v328_v6, 0 }
  0x14   : > { %v362_v7 = vsel %vm329_vm1, 65537, %v934_v1  ;;  %v363_v15 = vsel %vm330_vm2, 65537, %v934_v1 }
  0x15   : > { %v364_v12 = vunpack.c.l.b16 %v362_v7  ;;  %v365_v20 = vunpack.c.l.b16 %v363_v15 }
  0x16   : > { %484 = vperm.xlu0 %875, %v340_v3   ;;  %349 = vperm.xlu1 %876, %v340_v3  }
  0x17   : > { %vm366_vm4 = vcmp.ne.s32.totalorder %v364_v12, 0  ;;  %vm367_vm5 = vcmp.ne.s32.totalorder %v365_v20, 0 }
  0x1a   : > { %877 = vset.pattern.permute.xlu1 %v933_v0 }
  0x91   : > { %v481_v10 = vpop.permute.xlu0 %480  ;;  %v345_v11 = vpop.permute.xlu1 %344 }
  0x92   : > { %v491_v13 = vadd.f32 %v813_v8, %v481_v10  ;;  %v356_v14 = vadd.f32 %v809_v9, %v345_v11 }
  0x94   : > { %v493_v16 = vmul.f32 0.2, %v491_v13  ;;  %v358_v17 = vmul.f32 0.2, %v356_v14 }
  0x95   : > { %v485_v18 = vpop.permute.xlu0 %484  ;;  %v350_v19 = vpop.permute.xlu1 %349 }
  0x96   : > { %v495_v21 = vmax.f32 %v491_v13, %v493_v16  ;;  %v360_v22 = vmax.f32 %v356_v14, %v358_v17  ;;  %v492_v23 = vadd.f32 %v813_v8, %v485_v18  ;;  %v357_v24 = vadd.f32 %v809_v9, %v350_v19 }
  0x98   : > { %v494_v25 = vmul.f32 0.2, %v492_v23  ;;  %v359_v26 = vmul.f32 0.2, %v357_v24  ;;  %v497_v27 = vsel %vm366_vm4, %v495_v21, -1e+30 }
  0x99   : > { %v499_v28 = vsel %vm324_vm3, %v497_v27, -inf  ;;  %v1014_v29 = vsel %vm366_vm4, %v360_v22, -1e+30 }
  0x9a   : > { %v496_v30 = vmax.f32 %v492_v23, %v494_v25  ;;  %v361_v31 = vmax.f32 %v357_v24, %v359_v26  ;;  %500 = vmax.xlane.f32.xlu0 %v499_v28  ;;  %v371_v32 = vsel %vm324_vm3, %v1014_v29, -inf  ;;  %v337_v26 = vld [vmem:[#allocation3] sm:$0xff] }
  0x9c   : > { %v498_v33 = vsel %vm367_vm5, %v496_v30, -1e+30  ;;  %v1018_v34 = vsel %vm367_vm5, %v361_v31, -1e+30  ;;  %v338_v31 = vld [vmem:[#allocation3 + $0x8] sm:$0xff] }
  0x9d   : > { %v502_v35 = vsel %vm324_vm3, %v498_v33, -inf  ;;  %v374_v36 = vsel %vm324_vm3, %v1018_v34, -inf }
  0x9e   : > { %503 = vmax.xlane.f32.xlu1 %v502_v35  ;;  %372 = vmax.xlane.f32.xlu0 %v371_v32 }
  0xa2   : > { %375 = vmax.xlane.f32.xlu0 %v374_v36 }
 0x127   : > { %v501_v41 = vpop.xlane.xlu0 %500 }
 0x128   : > { %v1036_v42 = vmax.f32 %v1033_v40, %v501_v41 }
 0x12a   : > { %v507_v44 = vsub.f32 %v1033_v40, %v1036_v42  ;;  %515 = vperm.xlu1 %877, %v1036_v42  }
 0x12b   : > { %v504_v45 = vpop.xlane.xlu1 %503  ;;  %v373_v46 = vpop.xlane.xlu0 %372 }
 0x12c   : > { %v1044_v47 = vmax.f32 %v1038_v43, %v504_v45  ;;  %v377_v48 = vmax.f32 %v1033_v40, %v373_v46  ;;  %v509_v18 = vmul.f32 1.442695, %v507_v44 }
 0x12e   : > { %v508_v49 = vsub.f32 %v1038_v43, %v1044_v47  ;;  %v379_v50 = vsub.f32 %v1033_v40, %v377_v48  ;;  %v601_v51 = vsel %vm600_vm6, %v377_v48, %v1036_v42  ;;  %540 = vrot.lane.b32.xlu1 %v887_v37, %s937_s14  ;;  %520 = vperm.xlu0 %875, %v1044_v47  }
 0x12f   : > { %604 = vst.msk [vmem:[#allocation2] sm:$0xff] %vm319_vm0, %v601_v51  ;;  %v376_v52 = vpop.xlane.xlu0 %375  ;;  %879 = vset.pattern.permute.xlu1 %v934_v1 }
 0x130   : > { %v378_v53 = vmax.f32 %v1038_v43, %v376_v52  ;;  %v381_v19 = vmul.f32 1.442695, %v379_v50  ;;  %v511_v21 = vmul.f32 1.442695, %v508_v49 }
 0x132   : > { %v380_v54 = vsub.f32 %v1038_v43, %v378_v53  ;;  %v602_v55 = vsel %vm600_vm6, %v378_v53, %v1044_v47  ;;  %542 = vrot.lane.b32.xlu1 %v888_v39, %s937_s14  ;;  %878 = vset.pattern.permute.xlu0 %v934_v1 }
 0x133   : > { %605 = vst.msk [vmem:[#allocation2 + $0x8] sm:$0xff] %vm319_vm0, %v602_v55  ;;  %387 = vperm.xlu0 %878, %v377_v48  }
 0x134   : > { %v383_v20 = vmul.f32 1.442695, %v380_v54 }
 0x136   : > { %392 = vperm.xlu1 %879, %v378_v53  }
 0x13a   : > { %880 = vset.pattern.permute.xlu1 %v933_v0 }
 0x1a9   : > { %v516_v56 = vpop.permute.xlu1 %515 }
 0x1aa   : > { %v523_v57 = vsub.f32 %v497_v27, %v516_v56 }
 0x1ac   : > { %v525_v58 = vmul.f32 1.442695, %v523_v57 }
 0x1ad   : > { %v541_v59 = vpop.permute.xlu1 %540  ;;  %v521_v60 = vpop.permute.xlu0 %520 }
 0x1ae   : > { %889 = vpow2.f32 %v525_v58  ;;  %v524_v61 = vsub.f32 %v498_v33, %v521_v60  ;;  %837 = vmatpush3.bf16.msra.mxu1 %v541_v59  ;;  %v613_v59 = vld [vmem:[#allocation4] sm:$0xff] }
 0x1af   : > { %838 = vmatprep.subr.bf16.mxu1 %v936_v38 }
 0x1b0   : > { %v527_v62 = vmul.f32 1.442695, %v524_v61 }
 0x1b1   : > { %v543_v63 = vpop.permute.xlu1 %542 }
 0x1b2   : > { %891 = vpow2.f32 %v527_v62  ;;  %v388_v2 = vpop.permute.xlu0 %387  ;;  %839 = vmatpush3.bf16.msra.mxu1 %v543_v63  ;;  %v614_v63 = vld [vmem:[#allocation4 + $0x8] sm:$0xff] }
 0x1b3   : > { %v395_v3 = vsub.f32 %v1014_v29, %v388_v2 }
 0x1b5   : > { %v397_v4 = vmul.f32 1.442695, %v395_v3  ;;  %v393_v5 = vpop.permute.xlu1 %392 }
 0x1b6   : > { %v396_v6 = vsub.f32 %v1018_v34, %v393_v5 }
 0x1b7   : > { %893 = vpow2.f32 %v397_v4 }
 0x1b8   : > { %v890_v7 = vpop.eup %889  ;;  %v399_v8 = vmul.f32 1.442695, %v396_v6 }
 0x1b9   : > { %v531_v9 = vsel %vm324_vm3, %v890_v7, 0.0 }
 0x1ba   : > { %895 = vpow2.f32 %v399_v8  ;;  %532 = vadd.xlane.f32.xlu0 %v531_v9 }
 0x1bb   : > { %897 = vpow2.f32 %v509_v18 }
 0x1bc   : > { %v892_v10 = vpop.eup %891  ;;  %899 = vpow2.f32 %v381_v19 }
 0x1bd   : > { %v539_v11 = vpack.c.bf16 %v892_v10, %v890_v7  ;;  %v534_v17 = vsel %vm324_vm3, %v892_v10, 0.0  ;;  %901 = vpow2.f32 %v383_v20 }
 0x1be   : > { %903 = vpow2.f32 %v511_v21 }
 0x1bf   : > { %841 = vmatmul.mubr.msk.bf16.vlgmr.msra.gmra.mrb[0].mxu1 %vm324_vm3, %v539_v11  ;;  %v815_v11 = vld [vmem:[%s1112_s4] ss:$0 sm:$0xff] }
 0x1c1   : > { %v894_v12 = vpop.eup %893 }
 0x1c2   : > { %v403_v13 = vsel %vm324_vm3, %v894_v12, 0.0 }
 0x1c3   : > { %404 = vadd.xlane.f32.xlu1 %v403_v13 }
 0x1c4   : > { %v896_v14 = vpop.eup %895 }
 0x1c5   : > { %v406_v15 = vsel %vm324_vm3, %v896_v14, 0.0  ;;  %v411_v16 = vpack.c.bf16 %v896_v14, %v894_v12  ;;  %v898_v22 = vpop.eup %897 }
 0x1c6   : > { %407 = vadd.xlane.f32.xlu0 %v406_v15  ;;  %v900_v23 = vpop.eup %899  ;;  %v529_v28 = vmul.f32 %v898_v22, %v337_v26 }
 0x1c7   : > { %833 = vmatmul.mubr.msk.bf16.vlgmr.msra.gmra.mrb[0].mxu0 %vm324_vm3, %v411_v16  ;;  %535 = vadd.xlane.f32.xlu1 %v534_v17  ;;  %v902_v24 = vpop.eup %901  ;;  %v401_v29 = vmul.f32 %v900_v23, %v337_v26 }
 0x1c8   : > { %v904_v25 = vpop.eup %903  ;;  %v402_v34 = vmul.f32 %v902_v24, %v338_v31 }
 0x1c9   : > { %v530_v37 = vmul.f32 %v904_v25, %v338_v31 }
 0x1d8   : > { %592 = vperm.xlu1 %880, %v898_v22  }
 0x1dc   : > { %470 = vperm.xlu0 %878, %v900_v23   ;;  %881 = vset.pattern.permute.xlu1 %v934_v1 }
 0x1dd   : > { %475 = vperm.xlu1 %881, %v902_v24  }
 0x1e0   : > { %882 = vset.pattern.permute.xlu0 %v933_v0 }
 0x1e1   : > { %597 = vperm.xlu0 %882, %v904_v25   ;;  %884 = vset.pattern.permute.xlu1 %v933_v0 }
 0x1e5   : > { %883 = vset.pattern.permute.xlu0 %v934_v1 }
 0x247   : > { %v533_v27 = vpop.xlane.xlu0 %532 }
 0x248   : > { %v537_v32 = vadd.f32 %v533_v27, %v529_v28 }
 0x250   : > { %v405_v30 = vpop.xlane.xlu1 %404 }
 0x251   : > { %v409_v33 = vadd.f32 %v405_v30, %v401_v29 }
 0x253   : > { %v606_v35 = vsel %vm600_vm6, %v409_v33, %v537_v32  ;;  %v408_v36 = vpop.xlane.xlu0 %407 }
 0x254   : > { %608 = vst.msk [vmem:[#allocation3] sm:$0xff] %vm319_vm0, %v606_v35  ;;  %v410_v38 = vadd.f32 %v408_v36, %v402_v34  ;;  %v536_v39 = vpop.xlane.xlu1 %535 }
 0x255   : > { %v538_v40 = vadd.f32 %v536_v39, %v530_v37 }
 0x257   : > { %v607_v41 = vsel %vm600_vm6, %v410_v38, %v538_v40 }
 0x258   : > { %609 = vst.msk [vmem:[#allocation3 + $0x8] sm:$0xff] %vm319_vm0, %v607_v41  ;;  %v593_v56 = vpop.permute.xlu1 %592 }
 0x25b   : > { %v634_v42 = vld [vmem:[#allocation3] sm:$0xff]  ;;  %v471_v57 = vpop.permute.xlu0 %470 }
 0x25c   : > { %v636_v43 = vmax.f32 %v634_v42, 1e-20  ;;  %v476_v58 = vpop.permute.xlu1 %475 }
 0x25e   : > { %905 = vrcp.f32 %v636_v43 }
 0x25f   : > { %v635_v44 = vld [vmem:[#allocation3 + $0x8] sm:$0xff] }
 0x260   : > { %v637_v45 = vmax.f32 %v635_v44, 1e-20  ;;  %v598_v60 = vpop.permute.xlu0 %597 }
 0x261   : > { %v612_v2 = vsel %vm610_vm8, %v476_v58, %v598_v60 }
 0x262   : > { %907 = vrcp.f32 %v637_v45  ;;  %v616_v5 = vmul.f32 %v614_v63, %v612_v2 }
 0x268   : > { %v906_v46 = vpop.eup %905 }
 0x269   : > { %651 = vperm.xlu1 %884, %v906_v46   ;;  %642 = vperm.xlu0 %883, %v906_v46  }
 0x26c   : > { %v908_v47 = vpop.eup %907 }
 0x26d   : > { %886 = vset.pattern.permute.xlu0 %v933_v0  ;;  %885 = vset.pattern.permute.xlu1 %v934_v1  ;;  %v611_v1 = vsel %vm610_vm8, %v471_v57, %v593_v56 }
 0x26e   : > { %655 = vperm.xlu0 %886, %v908_v47   ;;  %v615_v61 = vmul.f32 %v613_v59, %v611_v1 }
 0x292   : > { %v583_v48 = vpop.f32.mrb[0].mxu1 }
 0x293   : > { %v842_v49 = vpop.f32.mrb[1].mxu1  ;;  %619 = vrot.lane.b32.xlu1 %v583_v48, %s939_s15 }
 0x294   : > { %v586_v50 = vpop.f32.mrb[2].mxu1 }
 0x295   : > { %v843_v51 = vpop.f32.mrb[3].mxu1 }
 0x297   : > { %621 = vrot.lane.b32.xlu1 %v586_v50, %s939_s15 }
 0x29a   : > { %v461_v52 = vpop.f32.mrb[0].mxu0 }
 0x29b   : > { %v834_v53 = vpop.f32.mrb[1].mxu0  ;;  %647 = vperm.xlu1 %885, %v908_v47  }
 0x29c   : > { %v464_v54 = vpop.f32.mrb[2].mxu0 }
 0x29d   : > { %v835_v55 = vpop.f32.mrb[3].mxu0 }
 0x2e8   : > { %v652_v0 = vpop.permute.xlu1 %651  ;;  %v643_v9 = vpop.permute.xlu0 %642 }
 0x2e9   : > { %v658_v10 = vsel %vm610_vm8, %v643_v9, %v652_v0 }
 0x2ed   : > { %v656_v17 = vpop.permute.xlu0 %655 }
 0x305   : > { %v620_v62 = vpop.permute.xlu1 %619 }
 0x306   : > { %v625_v3 = vsel %vm610_vm8, %v461_v52, %v620_v62 }
 0x307   : > { %v627_v4 = vadd.f32 %v625_v3, %v615_v61 }
 0x309   : > { %629 = vst.msk [vmem:[#allocation4] sm:$0xff] %vm324_vm3, %v627_v4  ;;  %v622_v6 = vpop.permute.xlu1 %621 }
 0x30a   : > { %v626_v7 = vsel %vm610_vm8, %v464_v54, %v622_v6 }
 0x30b   : > { %v628_v8 = vadd.f32 %v626_v7, %v616_v5 }
 0x30d   : > { %630 = vst.msk [vmem:[#allocation4 + $0x8] sm:$0xff] %vm324_vm3, %v628_v8 }
 0x310   : > { %v660_v12 = vld [vmem:[#allocation4] sm:$0xff] }
 0x311   : > { %v662_v13 = vmul.f32 %v660_v12, %v658_v10 }
 0x313   : > { %v671_v14 = vadd.f32 %v815_v11, %v662_v13 }
 0x314   : > { %v661_v20 = vld [vmem:[#allocation4 + $0x8] sm:$0xff] }
 0x315   : > { %v673_v15 = vmax.f32 %v671_v14, 0.0 }
 0x317   : > { %v820_v16 = vpack.c.bf16 %v673_v15, %v673_v15 }
 0x319   : > { %684 = vst.msk [vmem:[%s310_s24] sm:$0xf] %vm683_vm9, %v820_v16 }
 0x31a   : > { %v648_v18 = vpop.permute.xlu1 %647 }
 0x31b   : > { %v659_v19 = vsel %vm610_vm8, %v648_v18, %v656_v17 }
 0x31c   : > { %v663_v21 = vmul.f32 %v661_v20, %v659_v19 }
 0x31e   : > { %v672_v22 = vadd.f32 %v815_v11, %v663_v21 }
 0x320   : > { %v674_v23 = vmax.f32 %v672_v22, 0.0 }
 0x322   : > { %v821_v24 = vpack.c.bf16 %v674_v23, %v674_v23 }
 0x324   : > { %685 = vst.msk [vmem:[%s310_s24 + $0x4] sm:$0xf] %vm683_vm9, %v821_v24 }
 0x325 PF: > { %s15_s20 = sadd.s32 1, %s931_s20   ;;  %s1114_s18 = smov %s927_s19 }
 0x326   : > { %p12_p5 = scmp.ge.s32.totalorder %s15_s20, 4   ;;  %s1115_s19 = smov %s1117_s21 }
 0x328   :  { %14 = sbr.rel (!%p12_p5) target bundleno = 2 (0x2), region = 87 }

// kernel: _lambda_.11
= control target key start
LH: loop header
LB: loop body
LE: loop exit
PB: predicated region body
PF: predicated region fallthrough
CT: control target
= control target key end

     0   :  { %s783_s18 = smov 0   ;;  %s785_s19 = smov 0   ;;  %s860_s0 = inlined_call_operand.vmem [shape: bf16[32,32], index: 0, kind: input, shape index: {}]   ;;  %s861_s1 = inlined_call_operand.vmem [shape: f32[32,1], index: 1, kind: input, shape index: {}]   ;;  %s862_s2 = inlined_call_operand.vmem [shape: f32[1,32], index: 2, kind: input, shape index: {}]   ;;  %s863_s3 = inlined_call_operand.vmem [shape: bf16[32,16], index: 3, kind: input, shape index: {}]   ;;  %s864_s4 = inlined_call_operand.vmem [shape: f32[1,16], index: 4, kind: input, shape index: {}]   ;;  %s865_s5 = inlined_call_operand.vmem [shape: f32[32,16], index: 5, kind: output, shape index: {}]  }
   0x1   :  { %s787_s20 = smov 0  }
   0x2 LB: > { %s27_s21 = sadd.s32 1, %s743_s19  ;;  %p652_p0 = scmp.ge.s32.totalorder %s747_s20, 1  ;;  %s747_s20 = sphi %s787_s20, %s15_s20   ;;  %s743_s19 = sphi %s785_s19, %s867_s19   ;;  %s739_s18 = sphi %s783_s18, %s866_s18  }
   0x3   : > { %p29_p1 = scmp.ge.s32.totalorder %s27_s21, 2  ;;  %p235_p2 = scmp.lt.s32.totalorder %s747_s20, 3 }
   0x5   : > { %s869_s21 = smov (%p29_p1, %s27_s21), 0  ;;  %p236_p3 = pnand %p652_p0, %p235_p2 }
   0x6   : > { %s653_s22 = sshll.u32 (!%p236_p3), %s739_s18, 1  ;;  %v749_v0 = vmov (!%p236_p3), 0   ;;  %vm316_vm2 = vcmask (!%p236_p3), 7168   ;;  %v750_v7 = vmov (!%p236_p3), -1e+30   ;;  %vm369_vm4 = vcmask (!%p236_p3), 261120  }
   0x7   : > { %239 = sbr.rel (%p236_p3) target bundleno = 904 (0x388), region = 40  ;;  %705 = vset.pattern.permute.xlu0 (!%p236_p3), %v749_v0  ;;  %p280_p4 = scmp.lt.s32.totalorder (!%p236_p3), %s653_s22, 3  ;;  %706 = vset.pattern.permute.xlu1 (!%p236_p3), %v749_v0  ;;  %317 = vst.msk [vmem:[#allocation2] sm:$0xff] (!%p236_p3), %vm316_vm2, %v750_v7  ;;  %318 = vst.msk [vmem:[#allocation2 + $0x8] sm:$0xff] (!%p236_p3), %vm316_vm2, %v750_v7  ;;  %v659_v8 = vld [vmem:[%s862_s2] ss:$0 sm:$0xff] (!%p236_p3) }
   0x8   : > { %v751_v23 = vmov (!%p236_p3), 0.0   ;;  %v707_v32 = vld [vmem:[%s863_s3] sm:$0xff] (!%p236_p3)   ;;  %v708_v33 = vld [vmem:[%s863_s3 + $0x8] sm:$0xff] (!%p236_p3)   ;;  %vm752_vm6 = vmmov (!%p236_p3), 0   ;;  %vm321_vm7 = vcmask (!%p236_p3), 130048  }
   0x9   : > { %669 = vmatprep.subr.bf16.mxu0 (!%p236_p3), %v751_v23  ;;  %319 = vst.msk [vmem:[#allocation3] sm:$0xff] (!%p236_p3), %vm316_vm2, %v751_v23  ;;  %320 = vst.msk [vmem:[#allocation3 + $0x8] sm:$0xff] (!%p236_p3), %vm316_vm2, %v751_v23  ;;  %673 = vmatprep.mubr.msk.bf16.mxu0 (!%p236_p3), %vm752_vm6, %v751_v23 }
   0xa   : > { %670 = vmatpush3.bf16.msra.mxu0 (!%p236_p3), %v707_v32  ;;  %322 = vst.msk [vmem:[#allocation4] sm:$0xff] (!%p236_p3), %vm321_vm7, %v751_v23  ;;  %323 = vst.msk [vmem:[#allocation4 + $0x8] sm:$0xff] (!%p236_p3), %vm321_vm7, %v751_v23 }
   0xb   : > { %671 = vmatprep.subr.bf16.mxu0 (!%p236_p3), %v751_v23 }
   0xe   : > { %s871_s22 = smov (!%p280_p4, %s653_s22), 3  ;;  %v332_v24 = vld [vmem:[#allocation2] sm:$0xff]  ;;  %v333_v27 = vld [vmem:[#allocation2 + $0x8] sm:$0xff]  ;;  %672 = vmatpush3.bf16.msra.mxu0 %v708_v33 }
   0xf   : > { %s656_s23 = sshll.u32 %s871_s22, 3  ;;  %s654_s27 = sshll.u32 %s871_s22, 2 }
  0x10   : > { %s292_s26 = scalar_lea.vmem %s861_s1, %s656_s23  ;;  %s286_s30 = scalar_lea.vmem %s860_s0, %s654_s27  ;;  %v334_v49 = vld [vmem:[#allocation3] sm:$0xff]  ;;  %v335_v52 = vld [vmem:[#allocation3 + $0x8] sm:$0xff] }
  0x11   : > { %v336_v1 = vld [vmem:[%s292_s26] sm:$0xff]  ;;  %v337_v2 = vld [vmem:[%s292_s26 + $0x8] sm:$0xff]  ;;  %s307_s16 = scalar_lea.vmem %s865_s5, %s656_s23 }
  0x12   : > { %341 = vperm.xlu0 %705, %v336_v1   ;;  %v324_v3 = vld [vmem:[%s286_s30] sm:$0xf]  ;;  %v325_v5 = vld [vmem:[%s286_s30 + $0x4] sm:$0xf]  ;;  %v483_v1 = vld [vmem:[#allocation4 + $0x8] sm:$0xff] }
  0x13   : > { %vm326_vm0 = vcmp.gt.bf16.partialorder %v324_v3, 0  ;;  %vm327_vm1 = vcmp.gt.bf16.partialorder %v325_v5, 0  ;;  %v482_v63 = vld [vmem:[#allocation4] sm:$0xff] }
  0x14   : > { %v361_v4 = vsel %vm326_vm0, 65537, %v749_v0  ;;  %v362_v6 = vsel %vm327_vm1, 65537, %v749_v0 }
  0x15   : > { %v363_v10 = vunpack.c.l.b16 %v361_v4  ;;  %v364_v14 = vunpack.c.l.b16 %v362_v6 }
  0x16   : > { %346 = vperm.xlu0 %705, %v337_v2  }
  0x17   : > { %vm365_vm3 = vcmp.ne.s32.totalorder %v363_v10, 0  ;;  %vm366_vm5 = vcmp.ne.s32.totalorder %v364_v14, 0 }
  0x91   : > { %v342_v9 = vpop.permute.xlu0 %341 }
  0x92   : > { %v355_v11 = vadd.f32 %v659_v8, %v342_v9 }
  0x94   : > { %v357_v12 = vmul.f32 0.2, %v355_v11 }
  0x95   : > { %v347_v13 = vpop.permute.xlu0 %346 }
  0x96   : > { %v359_v15 = vmax.f32 %v355_v11, %v357_v12  ;;  %v356_v16 = vadd.f32 %v659_v8, %v347_v13  ;;  %v663_v11 = vld [vmem:[%s864_s4] ss:$0 sm:$0xff] }
  0x98   : > { %v358_v17 = vmul.f32 0.2, %v356_v16  ;;  %v367_v18 = vsel %vm365_vm3, %v359_v15, -1e+30 }
  0x99   : > { %v370_v19 = vsel %vm369_vm4, %v367_v18, -inf }
  0x9a   : > { %v360_v20 = vmax.f32 %v356_v16, %v358_v17  ;;  %371 = vmax.xlane.f32.xlu1 %v370_v19 }
  0x9c   : > { %v368_v21 = vsel %vm366_vm5, %v360_v20, -1e+30 }
  0x9d   : > { %v373_v22 = vsel %vm369_vm4, %v368_v21, -inf }
  0x9e   : > { %374 = vmax.xlane.f32.xlu1 %v373_v22 }
 0x127   : > { %v372_v25 = vpop.xlane.xlu1 %371 }
 0x128   : > { %v376_v26 = vmax.f32 %v332_v24, %v372_v25 }
 0x12a   : > { %v378_v28 = vsub.f32 %v332_v24, %v376_v26  ;;  %478 = vst.msk [vmem:[#allocation2] sm:$0xff] %vm316_vm2, %v376_v26  ;;  %386 = vperm.xlu0 %705, %v376_v26  }
 0x12b   : > { %v375_v29 = vpop.xlane.xlu1 %374 }
 0x12c   : > { %v377_v30 = vmax.f32 %v333_v27, %v375_v29  ;;  %v380_v46 = vmul.f32 1.442695, %v378_v28 }
 0x12e   : > { %v379_v31 = vsub.f32 %v333_v27, %v377_v30  ;;  %479 = vst.msk [vmem:[#allocation2 + $0x8] sm:$0xff] %vm316_vm2, %v377_v30  ;;  %391 = vperm.xlu1 %706, %v377_v30  }
 0x130   : > { %v382_v45 = vmul.f32 1.442695, %v379_v31 }
 0x1a9   : > { %v387_v34 = vpop.permute.xlu0 %386 }
 0x1aa   : > { %v394_v35 = vsub.f32 %v367_v18, %v387_v34 }
 0x1ac   : > { %v396_v36 = vmul.f32 1.442695, %v394_v35 }
 0x1ad   : > { %v392_v37 = vpop.permute.xlu1 %391 }
 0x1ae   : > { %709 = vpow2.f32 %v396_v36  ;;  %v395_v38 = vsub.f32 %v368_v21, %v392_v37 }
 0x1b0   : > { %v398_v39 = vmul.f32 1.442695, %v395_v38 }
 0x1b2   : > { %711 = vpow2.f32 %v398_v39 }
 0x1b3   : > { %713 = vpow2.f32 %v382_v45 }
 0x1b4   : > { %715 = vpow2.f32 %v380_v46 }
 0x1b8   : > { %v710_v40 = vpop.eup %709 }
 0x1b9   : > { %v402_v41 = vsel %vm369_vm4, %v710_v40, 0.0 }
 0x1ba   : > { %403 = vadd.xlane.f32.xlu0 %v402_v41 }
 0x1bc   : > { %v712_v42 = vpop.eup %711 }
 0x1bd   : > { %v405_v43 = vsel %vm369_vm4, %v712_v42, 0.0  ;;  %v410_v44 = vpack.c.bf16 %v712_v42, %v710_v40  ;;  %v714_v47 = vpop.eup %713 }
 0x1be   : > { %406 = vadd.xlane.f32.xlu1 %v405_v43  ;;  %v716_v48 = vpop.eup %715  ;;  %v401_v54 = vmul.f32 %v714_v47, %v335_v52 }
 0x1bf   : > { %674 = vmatmul.mubr.msk.bf16.vlgmr.msra.gmra.mrb[0].mxu0 %vm369_vm4, %v410_v44  ;;  %v400_v50 = vmul.f32 %v716_v48, %v334_v49 }
 0x1cf   : > { %474 = vperm.xlu1 %706, %v714_v47  }
 0x1d0   : > { %469 = vperm.xlu0 %705, %v716_v48  }
 0x247   : > { %v404_v51 = vpop.xlane.xlu0 %403 }
 0x248   : > { %v408_v53 = vadd.f32 %v404_v51, %v400_v50 }
 0x24a   : > { %480 = vst.msk [vmem:[#allocation3] sm:$0xff] %vm316_vm2, %v408_v53 }
 0x24b   : > { %v407_v55 = vpop.xlane.xlu1 %406 }
 0x24c   : > { %v409_v56 = vadd.f32 %v407_v55, %v401_v54 }
 0x24e   : > { %481 = vst.msk [vmem:[#allocation3 + $0x8] sm:$0xff] %vm316_vm2, %v409_v56 }
 0x24f   : > { %v470_v0 = vpop.permute.xlu0 %469  ;;  %v475_v2 = vpop.permute.xlu1 %474 }
 0x250   : > { %v484_v3 = vmul.f32 %v482_v63, %v470_v0  ;;  %v485_v5 = vmul.f32 %v483_v1, %v475_v2 }
 0x251   : > { %v494_v57 = vld [vmem:[#allocation3] sm:$0xff] }
 0x252   : > { %v496_v58 = vmax.f32 %v494_v57, 1e-20 }
 0x254   : > { %717 = vrcp.f32 %v496_v58 }
 0x255   : > { %v495_v59 = vld [vmem:[#allocation3 + $0x8] sm:$0xff] }
 0x256   : > { %v497_v60 = vmax.f32 %v495_v59, 1e-20 }
 0x258   : > { %719 = vrcp.f32 %v497_v60 }
 0x25e   : > { %v718_v61 = vpop.eup %717 }
 0x25f   : > { %502 = vperm.xlu0 %705, %v718_v61  }
 0x262   : > { %v720_v62 = vpop.eup %719 }
 0x263   : > { %507 = vperm.xlu0 %705, %v720_v62  }
 0x292   : > { %v460_v4 = vpop.f32.mrb[0].mxu0 }
 0x293   : > { %v486_v6 = vadd.f32 %v484_v3, %v460_v4  ;;  %v675_v7 = vpop.f32.mrb[1].mxu0 }
 0x294   : > { %v463_v8 = vpop.f32.mrb[2].mxu0 }
 0x295   : > { %489 = vst.msk [vmem:[#allocation4] sm:$0xff] %vm321_vm7, %v486_v6  ;;  %v487_v9 = vadd.f32 %v485_v5, %v463_v8  ;;  %v676_v10 = vpop.f32.mrb[3].mxu0 }
 0x297   : > { %490 = vst.msk [vmem:[#allocation4 + $0x8] sm:$0xff] %vm321_vm7, %v487_v9 }
 0x29c   : > { %v510_v13 = vld [vmem:[#allocation4] sm:$0xff] }
 0x29e   : > { %v511_v16 = vld [vmem:[#allocation4 + $0x8] sm:$0xff] }
 0x2de   : > { %v503_v12 = vpop.permute.xlu0 %502 }
 0x2df   : > { %v512_v14 = vmul.f32 %v510_v13, %v503_v12 }
 0x2e1   : > { %v521_v15 = vadd.f32 %v663_v11, %v512_v14 }
 0x2e2   : > { %v508_v17 = vpop.permute.xlu0 %507 }
 0x2e3   : > { %v513_v18 = vmul.f32 %v511_v16, %v508_v17  ;;  %v523_v19 = vmul.f32 %v521_v15, %v521_v15 }
 0x2e5   : > { %v522_v20 = vadd.f32 %v663_v11, %v513_v18  ;;  %v525_v21 = vsel %vm321_vm7, %v523_v19, 0.0 }
 0x2e6   : > { %526 = vadd.xlane.f32.xlu0 %v525_v21 }
 0x2e7   : > { %v524_v22 = vmul.f32 %v522_v20, %v522_v20 }
 0x2e9   : > { %v528_v23 = vsel %vm321_vm7, %v524_v22, 0.0 }
 0x2ea   : > { %529 = vadd.xlane.f32.xlu1 %v528_v23 }
 0x373   : > { %v527_v24 = vpop.xlane.xlu0 %526 }
 0x374   : > { %v531_v25 = vmax.f32 %v527_v24, 1e-24 }
 0x376   : > { %721 = vrsqrt.f32 %v531_v25 }
 0x377   : > { %v530_v26 = vpop.xlane.xlu1 %529 }
 0x378   : > { %v532_v27 = vmax.f32 %v530_v26, 1e-24 }
 0x37a   : > { %723 = vrsqrt.f32 %v532_v27 }
 0x380   : > { %v722_v28 = vpop.eup %721 }
 0x381   : > { %v535_v29 = vmul.f32 %v722_v28, %v521_v15 }
 0x383   : > { %537 = vst.msk [vmem:[%s307_s16] sm:$0xff] %vm321_vm7, %v535_v29 }
 0x384   : > { %v724_v30 = vpop.eup %723 }
 0x385   : > { %v536_v31 = vmul.f32 %v724_v30, %v522_v20 }
 0x387   : > { %538 = vst.msk [vmem:[%s307_s16 + $0x8] sm:$0xff] %vm321_vm7, %v536_v31 }
 0x388 PF: > { %s15_s20 = sadd.s32 1, %s747_s20   ;;  %s866_s18 = smov %s743_s19 }
 0x389   : > { %p12_p5 = scmp.ge.s32.totalorder %s15_s20, 4   ;;  %s867_s19 = smov %s869_s21 }
 0x38b   :  { %14 = sbr.rel (!%p12_p5) target bundleno = 2 (0x2), region = 87 }

</bundles_post_ra>
